<compile_context>
chip_gen: v5e
topology: v5e:2x2
jax: 0.10.0
libtpu: 0.0.40
codegen_flags: <defaults>
</compile_context>

<pallas_src>
import functools
import math

import jax
import jax.numpy as jnp
from jax.experimental import pallas as pl
from jax.experimental.pallas import tpu as pltpu

# ----------------------------- model config (small) -----------------------------
VOCAB = 50
MAX_POS = 16
HIDDEN = 32          # BERT hidden size (small stand-in for 768)
N_HEADS = 2
HEAD_DIM = HIDDEN // N_HEADS
INTER = 64           # FFN intermediate
N_LAYERS = 2
NUMERIC_SIZE = 3
NUMERIC_HIDDEN = 32  # nn.Linear(numeric_size, 32) -> nn.Linear(32, 32)
FUSION = 64          # small stand-in for fusion_size=256
LN_EPS = 1e-12
MASK_BIAS = -1e9


# ----------------------------- in-kernel helpers ---------------------------------
def _ln(x, g, b):
    """LayerNorm over the last axis. x:[M,H], g/b:[1,H]."""
    mu = jnp.mean(x, axis=-1, keepdims=True)
    var = jnp.mean((x - mu) ** 2, axis=-1, keepdims=True)
    return (x - mu) * jax.lax.rsqrt(var + LN_EPS) * g + b


# ----------------------------- fully fused kernel --------------------------------
def _fused_kernel(emb_ref, mask_ref, eg_ref, eb_ref,
                  wqkv_ref, bqkv_ref, wo_ref, bo_ref,
                  ln1g_ref, ln1b_ref, w1_ref, b1_ref, w2_ref, b2_ref,
                  ln2g_ref, ln2b_ref,
                  num_ref, wn1_ref, bn1_ref, wn2_ref, bn2_ref,
                  wf1_ref, bf1_ref, wf2_ref, bf2_ref,
                  o_ref, hid_ref,
                  *, batch, seq, n_heads, head_dim):
    """One grid step == one transformer layer. hid_ref (VMEM scratch, [B*S,H]) carries the
    hidden state across layers; the fusion head runs on the last layer only and writes the
    [B,1] output block."""
    l = pl.program_id(0)
    hidden = n_heads * head_dim

    # Layer 0: initialize carried state with the embedding LayerNorm.
    @pl.when(l == 0)
    def _init():
        hid_ref[...] = _ln(emb_ref[...], eg_ref[...], eb_ref[...])

    x = hid_ref[...]                                                   # [B*S, H]

    # ---- fused QKV projection: [B*S, H] @ [H, 3H] ----
    qkv = jnp.dot(x, wqkv_ref[...], preferred_element_type=jnp.float32) + bqkv_ref[...]
    q = qkv[:, 0 * hidden:1 * hidden]
    k = qkv[:, 1 * hidden:2 * hidden]
    v = qkv[:, 2 * hidden:3 * hidden]

    # Additive mask bias computed in-kernel (one VPU fmadd on [B,S]).
    mb = (1.0 - mask_ref[...].astype(jnp.float32)) * MASK_BIAS          # [B, S]

    # ---- batched attention over a [nH*B, S, dH] layout (2 einsums / layer) ----
    def to_bh(t):  # [B*S, H] -> [nH*B, S, dH], head-major along the batch axis
        return jnp.concatenate(
            [t[:, h * head_dim:(h + 1) * head_dim].reshape(batch, seq, head_dim)
             for h in range(n_heads)], axis=0)

    q3, k3, v3 = to_bh(q), to_bh(k), to_bh(v)
    bias3 = jnp.concatenate([mb] * n_heads, axis=0)[:, None, :]          # [nH*B, 1, S]

    scale = 1.0 / math.sqrt(head_dim)
    # NOTE: bias added before max-subtract; a fully-masked row gives a uniform
    # distribution rather than NaN (differs from torch softmax edge case).
    s = jnp.einsum('bqd,bkd->bqk', q3, k3,
                   preferred_element_type=jnp.float32) * scale + bias3   # [nH*B, S, S]
    s = s - jnp.max(s, axis=-1, keepdims=True)
    p = jnp.exp(s)
    p = p * pl.reciprocal(jnp.sum(p, axis=-1, keepdims=True), approx=True)
    ctx3 = jnp.einsum('bqk,bkd->bqd', p, v3,
                      preferred_element_type=jnp.float32)                # [nH*B, S, dH]

    # merge heads back onto the lane axis -> [B*S, H]
    ctx = jnp.concatenate(
        [ctx3[h * batch:(h + 1) * batch].reshape(batch * seq, head_dim)
         for h in range(n_heads)], axis=-1)

    # ---- output projection + residual + LayerNorm ----
    attn_out = jnp.dot(ctx, wo_ref[...], preferred_element_type=jnp.float32) + bo_ref[...]
    h1 = _ln(attn_out + x, ln1g_ref[...], ln1b_ref[...])

    # ---- FFN + residual + LayerNorm ----
    ff = jax.nn.gelu(
        jnp.dot(h1, w1_ref[...], preferred_element_type=jnp.float32) + b1_ref[...],
        approximate=True)
    ff = jnp.dot(ff, w2_ref[...], preferred_element_type=jnp.float32) + b2_ref[...]
    hid_ref[...] = _ln(ff + h1, ln2g_ref[...], ln2b_ref[...])

    # ---- fusion head, last layer only (merged into this kernel) ----
    @pl.when(l == pl.num_programs(0) - 1)
    def _head():
        # CLS rows (token 0 of each sequence) via one strided sublane load.
        cls = hid_ref[pl.ds(0, batch, stride=seq), :]                    # [B, H]

        # numeric_fc: Linear(3->32) -> ReLU -> Linear(32->32).
        # K=3 contraction as three VPU rank-1 updates (no pad, no tiny MXU pass).
        num = num_ref[...]                                               # [B, 3]
        wn1 = wn1_ref[...]                                               # [3, 32]
        n1 = (num[:, 0:1] * wn1[0:1, :]
              + num[:, 1:2] * wn1[1:2, :]
              + num[:, 2:3] * wn1[2:3, :]) + bn1_ref[...]
        n1 = jnp.maximum(n1, 0.0)
        nf = jnp.dot(n1, wn2_ref[...], preferred_element_type=jnp.float32) + bn2_ref[...]

        fused = jnp.concatenate([cls, nf], axis=-1)                      # [B, H+32]

        # fusion_fc: Linear(H+32 -> FUSION) -> ReLU -> Linear(FUSION -> 1)
        f1 = jnp.dot(fused, wf1_ref[...], preferred_element_type=jnp.float32) + bf1_ref[...]
        f1 = jnp.maximum(f1, 0.0)
        # Final N=1 projection as VPU multiply + lane reduction.
        o_ref[...] = jnp.sum(f1 * wf2_ref[...], axis=-1, keepdims=True) + bf2_ref[...]


def fused_forward(params, emb, attention_mask, numeric, *, batch, seq):
    """emb: [B*S, H]; attention_mask: [B, S] int; numeric: [B, 3] f32. Returns [B, 1]."""
    BS, H = emb.shape
    L = params["wqkv"].shape[0]
    H3 = 3 * H
    NH = NUMERIC_HIDDEN
    F = FUSION

    kernel = functools.partial(_fused_kernel, batch=batch, seq=seq,
                               n_heads=N_HEADS, head_dim=HEAD_DIM)
    c2 = lambda l: (0, 0)          # layer-invariant 2-D blocks
    p3 = lambda l: (l, 0, 0)       # per-layer 3-D blocks, leading (layer) dim squeezed

    return pl.pallas_call(
        kernel,
        out_shape=jax.ShapeDtypeStruct((batch, 1), jnp.float32),
        grid=(L,),
        in_specs=[
            pl.BlockSpec((BS, H), c2),                 # emb (word+pos+type sum)
            pl.BlockSpec((batch, seq), c2),            # attention_mask [B,S] int32
            pl.BlockSpec((1, H), c2),                  # emb_ln_g
            pl.BlockSpec((1, H), c2),                  # emb_ln_b
            pl.BlockSpec((None, H, H3), p3),           # wqkv
            pl.BlockSpec((None, 1, H3), p3),           # bqkv
            pl.BlockSpec((None, H, H), p3),            # wo
            pl.BlockSpec((None, 1, H), p3),            # bo
            pl.BlockSpec((None, 1, H), p3),            # ln1_g
            pl.BlockSpec((None, 1, H), p3),            # ln1_b
            pl.BlockSpec((None, H, INTER), p3),        # w1
            pl.BlockSpec((None, 1, INTER), p3),        # b1
            pl.BlockSpec((None, INTER, H), p3),        # w2
            pl.BlockSpec((None, 1, H), p3),            # b2
            pl.BlockSpec((None, 1, H), p3),            # ln2_g
            pl.BlockSpec((None, 1, H), p3),            # ln2_b
            pl.BlockSpec((batch, NUMERIC_SIZE), c2),   # numeric [B,3]
            pl.BlockSpec((NUMERIC_SIZE, NH), c2),      # wn1
            pl.BlockSpec((1, NH), c2),                 # bn1
            pl.BlockSpec((NH, NH), c2),                # wn2
            pl.BlockSpec((1, NH), c2),                 # bn2
            pl.BlockSpec((H + NH, F), c2),             # wf1
            pl.BlockSpec((1, F), c2),                  # bf1
            pl.BlockSpec((1, F), c2),                  # wf2 (stored as a row)
            pl.BlockSpec((1, 1), c2),                  # bf2
        ],
        out_specs=pl.BlockSpec((batch, 1), c2),
        scratch_shapes=[pltpu.VMEM((BS, H), jnp.float32)],   # carried hidden state
        compiler_params=pltpu.CompilerParams(dimension_semantics=("arbitrary",)),
    )(emb, attention_mask, params["emb_ln_g"], params["emb_ln_b"],
      params["wqkv"], params["bqkv"], params["wo"], params["bo"],
      params["ln1_g"], params["ln1_b"], params["w1"], params["b1"],
      params["w2"], params["b2"], params["ln2_g"], params["ln2_b"],
      numeric, params["wn1"], params["bn1"], params["wn2"], params["bn2"],
      params["wf1"], params["bf1"], params["wf2"], params["bf2"])


# ----------------------------- parameter init ------------------------------------
def init_params(key):
    keys = iter(jax.random.split(key, 64))

    def w(shape, scale=0.02):
        return (scale * jax.random.normal(next(keys), shape)).astype(jnp.float32)

    def zeros(shape):
        return jnp.zeros(shape, jnp.float32)

    def ones(shape):
        return jnp.ones(shape, jnp.float32)

    L, H = N_LAYERS, HIDDEN
    return {
        "word_emb": w((VOCAB, H)),
        "pos_emb": w((MAX_POS, H)),
        "type_emb": w((2, H)),
        "emb_ln_g": ones((1, H)), "emb_ln_b": zeros((1, H)),
        # per-layer weights stacked on a leading [L] axis; Q|K|V fused into [H, 3H]
        "wqkv": w((L, H, 3 * H)), "bqkv": zeros((L, 1, 3 * H)),
        "wo": w((L, H, H)), "bo": zeros((L, 1, H)),
        "ln1_g": ones((L, 1, H)), "ln1_b": zeros((L, 1, H)),
        "w1": w((L, H, INTER)), "b1": zeros((L, 1, INTER)),
        "w2": w((L, INTER, H)), "b2": zeros((L, 1, H)),
        "ln2_g": ones((L, 1, H)), "ln2_b": zeros((L, 1, H)),
        # numeric_fc: Linear(3,32) -> ReLU -> Linear(32,32)
        "wn1": w((NUMERIC_SIZE, NUMERIC_HIDDEN)), "bn1": zeros((1, NUMERIC_HIDDEN)),
        "wn2": w((NUMERIC_HIDDEN, NUMERIC_HIDDEN)), "bn2": zeros((1, NUMERIC_HIDDEN)),
        # fusion_fc: Linear(H+32, FUSION) -> ReLU -> Linear(FUSION, 1)
        # wf2 stored as a [1, FUSION] row so the last projection is a lane reduction.
        "wf1": w((HIDDEN + NUMERIC_HIDDEN, FUSION)), "bf1": zeros((1, FUSION)),
        "wf2": w((1, FUSION)), "bf2": zeros((1, 1)),
    }


# ----------------------------- forward pass --------------------------------------
def multimodal_forward(params, input_ids, attention_mask, numeric):
    B, S = input_ids.shape
    # Embedding gather + position/type add is data-dependent glue -> plain JAX.
    # token_type_ids assumed all-zero (matches the reference usage).
    emb = (params["word_emb"][input_ids]
           + params["pos_emb"][None, :S, :]
           + params["type_emb"][0][None, None, :]).reshape(B * S, HIDDEN)

    out = fused_forward(params, emb, attention_mask,
                        numeric.astype(jnp.float32), batch=B, seq=S)     # [B, 1]
    return jnp.squeeze(out, axis=1)                                      # [B]


# ----------------------------- main ----------------------------------------------
if __name__ == "__main__":
    key = jax.random.PRNGKey(0)
    k_params, k_ids, k_num = jax.random.split(key, 3)

    B, S = 2, 8
    params = init_params(k_params)
    input_ids = jax.random.randint(k_ids, (B, S), 0, VOCAB, dtype=jnp.int32)
    attention_mask = jnp.array([[1, 1, 1, 1, 1, 1, 1, 1],
                                [1, 1, 1, 1, 1, 1, 0, 0]], dtype=jnp.int32)
    numeric = jax.random.normal(k_num, (B, NUMERIC_SIZE), dtype=jnp.float32)

    fwd = jax.jit(multimodal_forward)
    out = fwd(params, input_ids, attention_mask, numeric)
    out = jax.block_until_ready(out)

    assert out.shape == (B,), out.shape
    assert out.dtype == jnp.float32
    print("KERNEL_OK")
</pallas_src>

<mosaic_0001>
module attributes {stable_mosaic.version = 11 : i64} {
  func.func @_fused_kernel(%arg0: i32, %arg1: memref<16x32xf32, #tpu.memory_space<vmem>>, %arg2: memref<2x8xi32, #tpu.memory_space<vmem>>, %arg3: memref<1x32xf32, #tpu.memory_space<vmem>>, %arg4: memref<1x32xf32, #tpu.memory_space<vmem>>, %arg5: memref<1x32x96xf32, #tpu.memory_space<vmem>>, %arg6: memref<1x1x96xf32, #tpu.memory_space<vmem>>, %arg7: memref<1x32x32xf32, #tpu.memory_space<vmem>>, %arg8: memref<1x1x32xf32, #tpu.memory_space<vmem>>, %arg9: memref<1x1x32xf32, #tpu.memory_space<vmem>>, %arg10: memref<1x1x32xf32, #tpu.memory_space<vmem>>, %arg11: memref<1x32x64xf32, #tpu.memory_space<vmem>>, %arg12: memref<1x1x64xf32, #tpu.memory_space<vmem>>, %arg13: memref<1x64x32xf32, #tpu.memory_space<vmem>>, %arg14: memref<1x1x32xf32, #tpu.memory_space<vmem>>, %arg15: memref<1x1x32xf32, #tpu.memory_space<vmem>>, %arg16: memref<1x1x32xf32, #tpu.memory_space<vmem>>, %arg17: memref<2x3xf32, #tpu.memory_space<vmem>>, %arg18: memref<3x32xf32, #tpu.memory_space<vmem>>, %arg19: memref<1x32xf32, #tpu.memory_space<vmem>>, %arg20: memref<32x32xf32, #tpu.memory_space<vmem>>, %arg21: memref<1x32xf32, #tpu.memory_space<vmem>>, %arg22: memref<64x64xf32, #tpu.memory_space<vmem>>, %arg23: memref<1x64xf32, #tpu.memory_space<vmem>>, %arg24: memref<1x64xf32, #tpu.memory_space<vmem>>, %arg25: memref<1x1xf32, #tpu.memory_space<vmem>>, %arg26: memref<2x1xf32, #tpu.memory_space<vmem>>, %arg27: memref<16x32xf32, #tpu.memory_space<vmem>>) attributes {dimension_semantics = [#tpu.dimension_semantics<arbitrary>], iteration_bounds = array<i64: 2>, scalar_prefetch = 0 : i64, scratch_operands = 1 : i64, tpu.core_type = #tpu.core_type<tc>, window_params = [{pipeline_mode = #tpu.pipeline_mode<synchronous>, transform_indices = @transform_0, window_bounds = array<i64: 16, 32>}, {pipeline_mode = #tpu.pipeline_mode<synchronous>, transform_indices = @transform_1, window_bounds = array<i64: 2, 8>}, {pipeline_mode = #tpu.pipeline_mode<synchronous>, transform_indices = @transform_2, window_bounds = array<i64: 1, 32>}, {pipeline_mode = #tpu.pipeline_mode<synchronous>, transform_indices = @transform_3, window_bounds = array<i64: 1, 32>}, {transform_indices = @transform_4, window_bounds = array<i64: 1, 32, 96>}, {transform_indices = @transform_5, window_bounds = array<i64: 1, 1, 96>}, {transform_indices = @transform_6, window_bounds = array<i64: 1, 32, 32>}, {transform_indices = @transform_7, window_bounds = array<i64: 1, 1, 32>}, {transform_indices = @transform_8, window_bounds = array<i64: 1, 1, 32>}, {transform_indices = @transform_9, window_bounds = array<i64: 1, 1, 32>}, {transform_indices = @transform_10, window_bounds = array<i64: 1, 32, 64>}, {transform_indices = @transform_11, window_bounds = array<i64: 1, 1, 64>}, {transform_indices = @transform_12, window_bounds = array<i64: 1, 64, 32>}, {transform_indices = @transform_13, window_bounds = array<i64: 1, 1, 32>}, {transform_indices = @transform_14, window_bounds = array<i64: 1, 1, 32>}, {transform_indices = @transform_15, window_bounds = array<i64: 1, 1, 32>}, {pipeline_mode = #tpu.pipeline_mode<synchronous>, transform_indices = @transform_16, window_bounds = array<i64: 2, 3>}, {pipeline_mode = #tpu.pipeline_mode<synchronous>, transform_indices = @transform_17, window_bounds = array<i64: 3, 32>}, {pipeline_mode = #tpu.pipeline_mode<synchronous>, transform_indices = @transform_18, window_bounds = array<i64: 1, 32>}, {pipeline_mode = #tpu.pipeline_mode<synchronous>, transform_indices = @transform_19, window_bounds = array<i64: 32, 32>}, {pipeline_mode = #tpu.pipeline_mode<synchronous>, transform_indices = @transform_20, window_bounds = array<i64: 1, 32>}, {pipeline_mode = #tpu.pipeline_mode<synchronous>, transform_indices = @transform_21, window_bounds = array<i64: 64, 64>}, {pipeline_mode = #tpu.pipeline_mode<synchronous>, transform_indices = @transform_22, window_bounds = array<i64: 1, 64>}, {pipeline_mode = #tpu.pipeline_mode<synchronous>, transform_indices = @transform_23, window_bounds = array<i64: 1, 64>}, {pipeline_mode = #tpu.pipeline_mode<synchronous>, transform_indices = @transform_24, window_bounds = array<i64: 1, 1>}, {pipeline_mode = #tpu.pipeline_mode<synchronous>, transform_indices = @transform_25, window_bounds = array<i64: 2, 1>}]} {
    %c0_i32 = arith.constant 0 : i32
    %0 = arith.cmpi eq, %arg0, %c0_i32 : i32
    %1 = arith.extui %0 : i1 to i32
    %c0_i32_0 = arith.constant 0 : i32
    %2 = arith.cmpi ne, %1, %c0_i32_0 : i32
    scf.if %2 {
      %c0_67 = arith.constant 0 : index
      %c0_68 = arith.constant 0 : index
      %150 = vector.load %arg1[%c0_67, %c0_68] : memref<16x32xf32, #tpu.memory_space<vmem>>, vector<16x32xf32>
      %c0_69 = arith.constant 0 : index
      %c0_70 = arith.constant 0 : index
      %151 = vector.load %arg3[%c0_69, %c0_70] : memref<1x32xf32, #tpu.memory_space<vmem>>, vector<1x32xf32>
      %c0_71 = arith.constant 0 : index
      %c0_72 = arith.constant 0 : index
      %152 = vector.load %arg4[%c0_71, %c0_72] : memref<1x32xf32, #tpu.memory_space<vmem>>, vector<1x32xf32>
      %cst_73 = arith.constant dense<0.000000e+00> : vector<16xf32>
      %153 = vector.multi_reduction <add>, %150, %cst_73 [1] : vector<16x32xf32> to vector<16xf32>
      %154 = vector.shape_cast %153 : vector<16xf32> to vector<16x1xf32>
      %cst_74 = arith.constant 3.200000e+01 : f32
      %155 = vector.broadcast %cst_74 : f32 to vector<16x1xf32>
      %156 = arith.divf %154, %155 : vector<16x1xf32>
      %157 = vector.broadcast %156 : vector<16x1xf32> to vector<16x32xf32>
      %158 = arith.subf %150, %157 : vector<16x32xf32>
      %159 = arith.mulf %158, %158 : vector<16x32xf32>
      %cst_75 = arith.constant dense<0.000000e+00> : vector<16xf32>
      %160 = vector.multi_reduction <add>, %159, %cst_75 [1] : vector<16x32xf32> to vector<16xf32>
      %161 = vector.shape_cast %160 : vector<16xf32> to vector<16x1xf32>
      %cst_76 = arith.constant 3.200000e+01 : f32
      %162 = vector.broadcast %cst_76 : f32 to vector<16x1xf32>
      %163 = arith.divf %161, %162 : vector<16x1xf32>
      %164 = vector.broadcast %156 : vector<16x1xf32> to vector<16x32xf32>
      %165 = arith.subf %150, %164 : vector<16x32xf32>
      %cst_77 = arith.constant 9.99999996E-13 : f32
      %166 = vector.broadcast %cst_77 : f32 to vector<16x1xf32>
      %167 = arith.addf %163, %166 : vector<16x1xf32>
      %168 = math.rsqrt %167 : vector<16x1xf32>
      %169 = vector.broadcast %168 : vector<16x1xf32> to vector<16x32xf32>
      %170 = arith.mulf %165, %169 : vector<16x32xf32>
      %171 = vector.broadcast %151 : vector<1x32xf32> to vector<16x32xf32>
      %172 = arith.mulf %170, %171 : vector<16x32xf32>
      %173 = vector.broadcast %152 : vector<1x32xf32> to vector<16x32xf32>
      %174 = arith.addf %172, %173 : vector<16x32xf32>
      %c0_78 = arith.constant 0 : index
      %c0_79 = arith.constant 0 : index
      %175 = vector.load %arg27[%c0_78, %c0_79] : memref<16x32xf32, #tpu.memory_space<vmem>>, vector<16x32xf32>
      tpu.vector_store %arg27[%c0_78, %c0_79], %174 {strides = array<i32>} : memref<16x32xf32, #tpu.memory_space<vmem>>, vector<16x32xf32>,
    } else {
    }
    %c0 = arith.constant 0 : index
    %c0_1 = arith.constant 0 : index
    %3 = vector.load %arg27[%c0, %c0_1] : memref<16x32xf32, #tpu.memory_space<vmem>>, vector<16x32xf32>
    %c0_2 = arith.constant 0 : index
    %c0_3 = arith.constant 0 : index
    %c0_4 = arith.constant 0 : index
    %4 = vector.load %arg5[%c0_2, %c0_3, %c0_4] : memref<1x32x96xf32, #tpu.memory_space<vmem>>, vector<1x32x96xf32>
    %5 = vector.shape_cast %4 : vector<1x32x96xf32> to vector<32x96xf32>
    %cst = arith.constant dense<0.000000e+00> : vector<16x96xf32>
    %6 = tpu.matmul %3, %5, %cst {dimension_numbers = #tpu.dot_dimension_numbers<[1], [0], [0], [1], [0, 0, 1, 1], [], []>} : vector<16x32xf32>, vector<32x96xf32>, vector<16x96xf32> -> vector<16x96xf32>
    %c0_5 = arith.constant 0 : index
    %c0_6 = arith.constant 0 : index
    %c0_7 = arith.constant 0 : index
    %7 = vector.load %arg6[%c0_5, %c0_6, %c0_7] : memref<1x1x96xf32, #tpu.memory_space<vmem>>, vector<1x1x96xf32>
    %8 = vector.shape_cast %7 : vector<1x1x96xf32> to vector<1x96xf32>
    %9 = vector.broadcast %8 : vector<1x96xf32> to vector<16x96xf32>
    %10 = arith.addf %6, %9 : vector<16x96xf32>
    %11 = vector.extract_strided_slice %10 {offsets = [0, 0], sizes = [16, 32], strides = [1, 1]} : vector<16x96xf32> to vector<16x32xf32>
    %12 = vector.extract_strided_slice %10 {offsets = [0, 32], sizes = [16, 32], strides = [1, 1]} : vector<16x96xf32> to vector<16x32xf32>
    %13 = vector.extract_strided_slice %10 {offsets = [0, 64], sizes = [16, 32], strides = [1, 1]} : vector<16x96xf32> to vector<16x32xf32>
    %c0_8 = arith.constant 0 : index
    %c0_9 = arith.constant 0 : index
    %14 = vector.load %arg2[%c0_8, %c0_9] : memref<2x8xi32, #tpu.memory_space<vmem>>, vector<2x8xi32>
    %15 = arith.sitofp %14 : vector<2x8xi32> to vector<2x8xf32>
    %cst_10 = arith.constant 1.000000e+00 : f32
    %16 = vector.broadcast %cst_10 : f32 to vector<2x8xf32>
    %17 = arith.subf %16, %15 : vector<2x8xf32>
    %cst_11 = arith.constant -1.000000e+09 : f32
    %18 = vector.broadcast %cst_11 : f32 to vector<2x8xf32>
    %19 = arith.mulf %17, %18 : vector<2x8xf32>
    %20 = vector.extract_strided_slice %11 {offsets = [0, 0], sizes = [16, 16], strides = [1, 1]} : vector<16x32xf32> to vector<16x16xf32>
    %21 = vector.shape_cast %20 : vector<16x16xf32> to vector<2x8x16xf32>
    %22 = vector.extract_strided_slice %11 {offsets = [0, 16], sizes = [16, 16], strides = [1, 1]} : vector<16x32xf32> to vector<16x16xf32>
    %23 = vector.shape_cast %22 : vector<16x16xf32> to vector<2x8x16xf32>
    %24 = tpu.concatenate %21, %23 in 0 : vector<2x8x16xf32>, vector<2x8x16xf32> -> vector<4x8x16xf32>
    %25 = vector.extract_strided_slice %12 {offsets = [0, 0], sizes = [16, 16], strides = [1, 1]} : vector<16x32xf32> to vector<16x16xf32>
    %26 = vector.shape_cast %25 : vector<16x16xf32> to vector<2x8x16xf32>
    %27 = vector.extract_strided_slice %12 {offsets = [0, 16], sizes = [16, 16], strides = [1, 1]} : vector<16x32xf32> to vector<16x16xf32>
    %28 = vector.shape_cast %27 : vector<16x16xf32> to vector<2x8x16xf32>
    %29 = tpu.concatenate %26, %28 in 0 : vector<2x8x16xf32>, vector<2x8x16xf32> -> vector<4x8x16xf32>
    %30 = vector.extract_strided_slice %13 {offsets = [0, 0], sizes = [16, 16], strides = [1, 1]} : vector<16x32xf32> to vector<16x16xf32>
    %31 = vector.shape_cast %30 : vector<16x16xf32> to vector<2x8x16xf32>
    %32 = vector.extract_strided_slice %13 {offsets = [0, 16], sizes = [16, 16], strides = [1, 1]} : vector<16x32xf32> to vector<16x16xf32>
    %33 = vector.shape_cast %32 : vector<16x16xf32> to vector<2x8x16xf32>
    %34 = tpu.concatenate %31, %33 in 0 : vector<2x8x16xf32>, vector<2x8x16xf32> -> vector<4x8x16xf32>
    %35 = tpu.concatenate %19, %19 in 0 : vector<2x8xf32>, vector<2x8xf32> -> vector<4x8xf32>
    %36 = vector.shape_cast %35 : vector<4x8xf32> to vector<4x1x8xf32>
    "tpu.trace_start"() <{level = 10 : i32, message = "bqd,bkd->bqk"}> : () -> ()
    %cst_12 = arith.constant dense<0.000000e+00> : vector<4x8x8xf32>
    %37 = tpu.matmul %24, %29, %cst_12 {dimension_numbers = #tpu.dot_dimension_numbers<[2], [2], [1], [1], [0, 0, 0, 1, 1, 1], [0], [0]>} : vector<4x8x16xf32>, vector<4x8x16xf32>, vector<4x8x8xf32> -> vector<4x8x8xf32>
    "tpu.trace_stop"() : () -> ()
    %cst_13 = arith.constant 2.500000e-01 : f32
    %38 = vector.broadcast %cst_13 : f32 to vector<4x8x8xf32>
    %39 = arith.mulf %37, %38 : vector<4x8x8xf32>
    %40 = vector.broadcast %36 : vector<4x1x8xf32> to vector<4x8x8xf32>
    %41 = arith.addf %39, %40 : vector<4x8x8xf32>
    %cst_14 = arith.constant dense<0xFF800000> : vector<4x8xf32>
    %42 = vector.multi_reduction <maximumf>, %41, %cst_14 [2] : vector<4x8x8xf32> to vector<4x8xf32>
    %43 = vector.shape_cast %42 : vector<4x8xf32> to vector<4x8x1xf32>
    %44 = vector.broadcast %43 : vector<4x8x1xf32> to vector<4x8x8xf32>
    %45 = arith.subf %41, %44 : vector<4x8x8xf32>
    %46 = math.exp %45 : vector<4x8x8xf32>
    %cst_15 = arith.constant dense<0.000000e+00> : vector<4x8xf32>
    %47 = vector.multi_reduction <add>, %46, %cst_15 [2] : vector<4x8x8xf32> to vector<4x8xf32>
    %48 = vector.shape_cast %47 : vector<4x8xf32> to vector<4x8x1xf32>
    %49 = tpu.reciprocal %48 {approx = true} : vector<4x8x1xf32> -> vector<4x8x1xf32>
    %50 = vector.broadcast %49 : vector<4x8x1xf32> to vector<4x8x8xf32>
    %51 = arith.mulf %46, %50 : vector<4x8x8xf32>
    "tpu.trace_start"() <{level = 10 : i32, message = "bqk,bkd->bqd"}> : () -> ()
    %cst_16 = arith.constant dense<0.000000e+00> : vector<4x8x16xf32>
    %52 = tpu.matmul %51, %34, %cst_16 {dimension_numbers = #tpu.dot_dimension_numbers<[2], [1], [1], [2], [0, 0, 0, 1, 1, 2], [0], [0]>} : vector<4x8x8xf32>, vector<4x8x16xf32>, vector<4x8x16xf32> -> vector<4x8x16xf32>
    "tpu.trace_stop"() : () -> ()
    %53 = vector.extract_strided_slice %52 {offsets = [0, 0, 0], sizes = [2, 8, 16], strides = [1, 1, 1]} : vector<4x8x16xf32> to vector<2x8x16xf32>
    %54 = vector.shape_cast %53 : vector<2x8x16xf32> to vector<16x16xf32>
    %55 = vector.extract_strided_slice %52 {offsets = [2, 0, 0], sizes = [2, 8, 16], strides = [1, 1, 1]} : vector<4x8x16xf32> to vector<2x8x16xf32>
    %56 = vector.shape_cast %55 : vector<2x8x16xf32> to vector<16x16xf32>
    %57 = tpu.concatenate %54, %56 in 1 : vector<16x16xf32>, vector<16x16xf32> -> vector<16x32xf32>
    %c0_17 = arith.constant 0 : index
    %c0_18 = arith.constant 0 : index
    %c0_19 = arith.constant 0 : index
    %58 = vector.load %arg7[%c0_17, %c0_18, %c0_19] : memref<1x32x32xf32, #tpu.memory_space<vmem>>, vector<1x32x32xf32>
    %59 = vector.shape_cast %58 : vector<1x32x32xf32> to vector<32x32xf32>
    %cst_20 = arith.constant dense<0.000000e+00> : vector<16x32xf32>
    %60 = tpu.matmul %57, %59, %cst_20 {dimension_numbers = #tpu.dot_dimension_numbers<[1], [0], [0], [1], [0, 0, 1, 1], [], []>} : vector<16x32xf32>, vector<32x32xf32>, vector<16x32xf32> -> vector<16x32xf32>
    %c0_21 = arith.constant 0 : index
    %c0_22 = arith.constant 0 : index
    %c0_23 = arith.constant 0 : index
    %61 = vector.load %arg8[%c0_21, %c0_22, %c0_23] : memref<1x1x32xf32, #tpu.memory_space<vmem>>, vector<1x1x32xf32>
    %62 = vector.shape_cast %61 : vector<1x1x32xf32> to vector<1x32xf32>
    %63 = vector.broadcast %62 : vector<1x32xf32> to vector<16x32xf32>
    %64 = arith.addf %60, %63 : vector<16x32xf32>
    %65 = arith.addf %64, %3 : vector<16x32xf32>
    %c0_24 = arith.constant 0 : index
    %c0_25 = arith.constant 0 : index
    %c0_26 = arith.constant 0 : index
    %66 = vector.load %arg9[%c0_24, %c0_25, %c0_26] : memref<1x1x32xf32, #tpu.memory_space<vmem>>, vector<1x1x32xf32>
    %67 = vector.shape_cast %66 : vector<1x1x32xf32> to vector<1x32xf32>
    %c0_27 = arith.constant 0 : index
    %c0_28 = arith.constant 0 : index
    %c0_29 = arith.constant 0 : index
    %68 = vector.load %arg10[%c0_27, %c0_28, %c0_29] : memref<1x1x32xf32, #tpu.memory_space<vmem>>, vector<1x1x32xf32>
    %69 = vector.shape_cast %68 : vector<1x1x32xf32> to vector<1x32xf32>
    %cst_30 = arith.constant dense<0.000000e+00> : vector<16xf32>
    %70 = vector.multi_reduction <add>, %65, %cst_30 [1] : vector<16x32xf32> to vector<16xf32>
    %71 = vector.shape_cast %70 : vector<16xf32> to vector<16x1xf32>
    %cst_31 = arith.constant 3.200000e+01 : f32
    %72 = vector.broadcast %cst_31 : f32 to vector<16x1xf32>
    %73 = arith.divf %71, %72 : vector<16x1xf32>
    %74 = vector.broadcast %73 : vector<16x1xf32> to vector<16x32xf32>
    %75 = arith.subf %65, %74 : vector<16x32xf32>
    %76 = arith.mulf %75, %75 : vector<16x32xf32>
    %cst_32 = arith.constant dense<0.000000e+00> : vector<16xf32>
    %77 = vector.multi_reduction <add>, %76, %cst_32 [1] : vector<16x32xf32> to vector<16xf32>
    %78 = vector.shape_cast %77 : vector<16xf32> to vector<16x1xf32>
    %cst_33 = arith.constant 3.200000e+01 : f32
    %79 = vector.broadcast %cst_33 : f32 to vector<16x1xf32>
    %80 = arith.divf %78, %79 : vector<16x1xf32>
    %81 = vector.broadcast %73 : vector<16x1xf32> to vector<16x32xf32>
    %82 = arith.subf %65, %81 : vector<16x32xf32>
    %cst_34 = arith.constant 9.99999996E-13 : f32
    %83 = vector.broadcast %cst_34 : f32 to vector<16x1xf32>
    %84 = arith.addf %80, %83 : vector<16x1xf32>
    %85 = math.rsqrt %84 : vector<16x1xf32>
    %86 = vector.broadcast %85 : vector<16x1xf32> to vector<16x32xf32>
    %87 = arith.mulf %82, %86 : vector<16x32xf32>
    %88 = vector.broadcast %67 : vector<1x32xf32> to vector<16x32xf32>
    %89 = arith.mulf %87, %88 : vector<16x32xf32>
    %90 = vector.broadcast %69 : vector<1x32xf32> to vector<16x32xf32>
    %91 = arith.addf %89, %90 : vector<16x32xf32>
    %c0_35 = arith.constant 0 : index
    %c0_36 = arith.constant 0 : index
    %c0_37 = arith.constant 0 : index
    %92 = vector.load %arg11[%c0_35, %c0_36, %c0_37] : memref<1x32x64xf32, #tpu.memory_space<vmem>>, vector<1x32x64xf32>
    %93 = vector.shape_cast %92 : vector<1x32x64xf32> to vector<32x64xf32>
    %cst_38 = arith.constant dense<0.000000e+00> : vector<16x64xf32>
    %94 = tpu.matmul %91, %93, %cst_38 {dimension_numbers = #tpu.dot_dimension_numbers<[1], [0], [0], [1], [0, 0, 1, 1], [], []>} : vector<16x32xf32>, vector<32x64xf32>, vector<16x64xf32> -> vector<16x64xf32>
    %c0_39 = arith.constant 0 : index
    %c0_40 = arith.constant 0 : index
    %c0_41 = arith.constant 0 : index
    %95 = vector.load %arg12[%c0_39, %c0_40, %c0_41] : memref<1x1x64xf32, #tpu.memory_space<vmem>>, vector<1x1x64xf32>
    %96 = vector.shape_cast %95 : vector<1x1x64xf32> to vector<1x64xf32>
    %97 = vector.broadcast %96 : vector<1x64xf32> to vector<16x64xf32>
    %98 = arith.addf %94, %97 : vector<16x64xf32>
    %99 = arith.mulf %98, %98 : vector<16x64xf32>
    %100 = arith.mulf %98, %99 : vector<16x64xf32>
    %cst_42 = arith.constant 4.471500e-02 : f32
    %101 = vector.broadcast %cst_42 : f32 to vector<16x64xf32>
    %102 = arith.mulf %101, %100 : vector<16x64xf32>
    %103 = arith.addf %98, %102 : vector<16x64xf32>
    %cst_43 = arith.constant 0.797884583 : f32
    %104 = vector.broadcast %cst_43 : f32 to vector<16x64xf32>
    %105 = arith.mulf %104, %103 : vector<16x64xf32>
    %106 = math.tanh %105 : vector<16x64xf32>
    %cst_44 = arith.constant 1.000000e+00 : f32
    %107 = vector.broadcast %cst_44 : f32 to vector<16x64xf32>
    %108 = arith.addf %107, %106 : vector<16x64xf32>
    %cst_45 = arith.constant 5.000000e-01 : f32
    %109 = vector.broadcast %cst_45 : f32 to vector<16x64xf32>
    %110 = arith.mulf %109, %108 : vector<16x64xf32>
    %111 = arith.mulf %98, %110 : vector<16x64xf32>
    %c0_46 = arith.constant 0 : index
    %c0_47 = arith.constant 0 : index
    %c0_48 = arith.constant 0 : index
    %112 = vector.load %arg13[%c0_46, %c0_47, %c0_48] : memref<1x64x32xf32, #tpu.memory_space<vmem>>, vector<1x64x32xf32>
    %113 = vector.shape_cast %112 : vector<1x64x32xf32> to vector<64x32xf32>
    %cst_49 = arith.constant dense<0.000000e+00> : vector<16x32xf32>
    %114 = tpu.matmul %111, %113, %cst_49 {dimension_numbers = #tpu.dot_dimension_numbers<[1], [0], [0], [1], [0, 0, 1, 1], [], []>} : vector<16x64xf32>, vector<64x32xf32>, vector<16x32xf32> -> vector<16x32xf32>
    %c0_50 = arith.constant 0 : index
    %c0_51 = arith.constant 0 : index
    %c0_52 = arith.constant 0 : index
    %115 = vector.load %arg14[%c0_50, %c0_51, %c0_52] : memref<1x1x32xf32, #tpu.memory_space<vmem>>, vector<1x1x32xf32>
    %116 = vector.shape_cast %115 : vector<1x1x32xf32> to vector<1x32xf32>
    %117 = vector.broadcast %116 : vector<1x32xf32> to vector<16x32xf32>
    %118 = arith.addf %114, %117 : vector<16x32xf32>
    %119 = arith.addf %118, %91 : vector<16x32xf32>
    %c0_53 = arith.constant 0 : index
    %c0_54 = arith.constant 0 : index
    %c0_55 = arith.constant 0 : index
    %120 = vector.load %arg15[%c0_53, %c0_54, %c0_55] : memref<1x1x32xf32, #tpu.memory_space<vmem>>, vector<1x1x32xf32>
    %121 = vector.shape_cast %120 : vector<1x1x32xf32> to vector<1x32xf32>
    %c0_56 = arith.constant 0 : index
    %c0_57 = arith.constant 0 : index
    %c0_58 = arith.constant 0 : index
    %122 = vector.load %arg16[%c0_56, %c0_57, %c0_58] : memref<1x1x32xf32, #tpu.memory_space<vmem>>, vector<1x1x32xf32>
    %123 = vector.shape_cast %122 : vector<1x1x32xf32> to vector<1x32xf32>
    %cst_59 = arith.constant dense<0.000000e+00> : vector<16xf32>
    %124 = vector.multi_reduction <add>, %119, %cst_59 [1] : vector<16x32xf32> to vector<16xf32>
    %125 = vector.shape_cast %124 : vector<16xf32> to vector<16x1xf32>
    %cst_60 = arith.constant 3.200000e+01 : f32
    %126 = vector.broadcast %cst_60 : f32 to vector<16x1xf32>
    %127 = arith.divf %125, %126 : vector<16x1xf32>
    %128 = vector.broadcast %127 : vector<16x1xf32> to vector<16x32xf32>
    %129 = arith.subf %119, %128 : vector<16x32xf32>
    %130 = arith.mulf %129, %129 : vector<16x32xf32>
    %cst_61 = arith.constant dense<0.000000e+00> : vector<16xf32>
    %131 = vector.multi_reduction <add>, %130, %cst_61 [1] : vector<16x32xf32> to vector<16xf32>
    %132 = vector.shape_cast %131 : vector<16xf32> to vector<16x1xf32>
    %cst_62 = arith.constant 3.200000e+01 : f32
    %133 = vector.broadcast %cst_62 : f32 to vector<16x1xf32>
    %134 = arith.divf %132, %133 : vector<16x1xf32>
    %135 = vector.broadcast %127 : vector<16x1xf32> to vector<16x32xf32>
    %136 = arith.subf %119, %135 : vector<16x32xf32>
    %cst_63 = arith.constant 9.99999996E-13 : f32
    %137 = vector.broadcast %cst_63 : f32 to vector<16x1xf32>
    %138 = arith.addf %134, %137 : vector<16x1xf32>
    %139 = math.rsqrt %138 : vector<16x1xf32>
    %140 = vector.broadcast %139 : vector<16x1xf32> to vector<16x32xf32>
    %141 = arith.mulf %136, %140 : vector<16x32xf32>
    %142 = vector.broadcast %121 : vector<1x32xf32> to vector<16x32xf32>
    %143 = arith.mulf %141, %142 : vector<16x32xf32>
    %144 = vector.broadcast %123 : vector<1x32xf32> to vector<16x32xf32>
    %145 = arith.addf %143, %144 : vector<16x32xf32>
    %c0_64 = arith.constant 0 : index
    %c0_65 = arith.constant 0 : index
    %146 = vector.load %arg27[%c0_64, %c0_65] : memref<16x32xf32, #tpu.memory_space<vmem>>, vector<16x32xf32>
    tpu.vector_store %arg27[%c0_64, %c0_65], %145 {strides = array<i32>} : memref<16x32xf32, #tpu.memory_space<vmem>>, vector<16x32xf32>,
    %c1_i32 = arith.constant 1 : i32
    %147 = arith.cmpi eq, %arg0, %c1_i32 : i32
    %148 = arith.extui %147 : i1 to i32
    %c0_i32_66 = arith.constant 0 : i32
    %149 = arith.cmpi ne, %148, %c0_i32_66 : i32
    scf.if %149 {
      %c0_67 = arith.constant 0 : index
      %c0_68 = arith.constant 0 : index
      %150 = tpu.strided_load %arg27[%c0_67, %c0_68] {strides = array<i32: 8, 1>} : memref<16x32xf32, #tpu.memory_space<vmem>>, vector<2x32xf32>
      %c0_69 = arith.constant 0 : index
      %c0_70 = arith.constant 0 : index
      %151 = vector.load %arg17[%c0_69, %c0_70] : memref<2x3xf32, #tpu.memory_space<vmem>>, vector<2x3xf32>
      %c0_71 = arith.constant 0 : index
      %c0_72 = arith.constant 0 : index
      %152 = vector.load %arg18[%c0_71, %c0_72] : memref<3x32xf32, #tpu.memory_space<vmem>>, vector<3x32xf32>
      %153 = vector.extract_strided_slice %151 {offsets = [0, 0], sizes = [2, 1], strides = [1, 1]} : vector<2x3xf32> to vector<2x1xf32>
      %154 = vector.extract_strided_slice %152 {offsets = [0, 0], sizes = [1, 32], strides = [1, 1]} : vector<3x32xf32> to vector<1x32xf32>
      %155 = vector.broadcast %153 : vector<2x1xf32> to vector<2x32xf32>
      %156 = vector.broadcast %154 : vector<1x32xf32> to vector<2x32xf32>
      %157 = arith.mulf %155, %156 : vector<2x32xf32>
      %158 = vector.extract_strided_slice %151 {offsets = [0, 1], sizes = [2, 1], strides = [1, 1]} : vector<2x3xf32> to vector<2x1xf32>
      %159 = vector.extract_strided_slice %152 {offsets = [1, 0], sizes = [1, 32], strides = [1, 1]} : vector<3x32xf32> to vector<1x32xf32>
      %160 = vector.broadcast %158 : vector<2x1xf32> to vector<2x32xf32>
      %161 = vector.broadcast %159 : vector<1x32xf32> to vector<2x32xf32>
      %162 = arith.mulf %160, %161 : vector<2x32xf32>
      %163 = arith.addf %157, %162 : vector<2x32xf32>
      %164 = vector.extract_strided_slice %151 {offsets = [0, 2], sizes = [2, 1], strides = [1, 1]} : vector<2x3xf32> to vector<2x1xf32>
      %165 = vector.extract_strided_slice %152 {offsets = [2, 0], sizes = [1, 32], strides = [1, 1]} : vector<3x32xf32> to vector<1x32xf32>
      %166 = vector.broadcast %164 : vector<2x1xf32> to vector<2x32xf32>
      %167 = vector.broadcast %165 : vector<1x32xf32> to vector<2x32xf32>
      %168 = arith.mulf %166, %167 : vector<2x32xf32>
      %169 = arith.addf %163, %168 : vector<2x32xf32>
      %c0_73 = arith.constant 0 : index
      %c0_74 = arith.constant 0 : index
      %170 = vector.load %arg19[%c0_73, %c0_74] : memref<1x32xf32, #tpu.memory_space<vmem>>, vector<1x32xf32>
      %171 = vector.broadcast %170 : vector<1x32xf32> to vector<2x32xf32>
      %172 = arith.addf %169, %171 : vector<2x32xf32>
      %cst_75 = arith.constant 0.000000e+00 : f32
      %173 = vector.broadcast %cst_75 : f32 to vector<2x32xf32>
      %174 = arith.maximumf %172, %173 : vector<2x32xf32>
      %c0_76 = arith.constant 0 : index
      %c0_77 = arith.constant 0 : index
      %175 = vector.load %arg20[%c0_76, %c0_77] : memref<32x32xf32, #tpu.memory_space<vmem>>, vector<32x32xf32>
      %cst_78 = arith.constant dense<0.000000e+00> : vector<2x32xf32>
      %176 = tpu.matmul %174, %175, %cst_78 {dimension_numbers = #tpu.dot_dimension_numbers<[1], [0], [0], [1], [0, 0, 1, 1], [], []>} : vector<2x32xf32>, vector<32x32xf32>, vector<2x32xf32> -> vector<2x32xf32>
      %c0_79 = arith.constant 0 : index
      %c0_80 = arith.constant 0 : index
      %177 = vector.load %arg21[%c0_79, %c0_80] : memref<1x32xf32, #tpu.memory_space<vmem>>, vector<1x32xf32>
      %178 = vector.broadcast %177 : vector<1x32xf32> to vector<2x32xf32>
      %179 = arith.addf %176, %178 : vector<2x32xf32>
      %180 = tpu.concatenate %150, %179 in 1 : vector<2x32xf32>, vector<2x32xf32> -> vector<2x64xf32>
      %c0_81 = arith.constant 0 : index
      %c0_82 = arith.constant 0 : index
      %181 = vector.load %arg22[%c0_81, %c0_82] : memref<64x64xf32, #tpu.memory_space<vmem>>, vector<64x64xf32>
      %cst_83 = arith.constant dense<0.000000e+00> : vector<2x64xf32>
      %182 = tpu.matmul %180, %181, %cst_83 {dimension_numbers = #tpu.dot_dimension_numbers<[1], [0], [0], [1], [0, 0, 1, 1], [], []>} : vector<2x64xf32>, vector<64x64xf32>, vector<2x64xf32> -> vector<2x64xf32>
      %c0_84 = arith.constant 0 : index
      %c0_85 = arith.constant 0 : index
      %183 = vector.load %arg23[%c0_84, %c0_85] : memref<1x64xf32, #tpu.memory_space<vmem>>, vector<1x64xf32>
      %184 = vector.broadcast %183 : vector<1x64xf32> to vector<2x64xf32>
      %185 = arith.addf %182, %184 : vector<2x64xf32>
      %cst_86 = arith.constant 0.000000e+00 : f32
      %186 = vector.broadcast %cst_86 : f32 to vector<2x64xf32>
      %187 = arith.maximumf %185, %186 : vector<2x64xf32>
      %c0_87 = arith.constant 0 : index
      %c0_88 = arith.constant 0 : index
      %188 = vector.load %arg24[%c0_87, %c0_88] : memref<1x64xf32, #tpu.memory_space<vmem>>, vector<1x64xf32>
      %189 = vector.broadcast %188 : vector<1x64xf32> to vector<2x64xf32>
      %190 = arith.mulf %187, %189 : vector<2x64xf32>
      %cst_89 = arith.constant dense<0.000000e+00> : vector<2xf32>
      %191 = vector.multi_reduction <add>, %190, %cst_89 [1] : vector<2x64xf32> to vector<2xf32>
      %192 = vector.shape_cast %191 : vector<2xf32> to vector<2x1xf32>
      %c0_90 = arith.constant 0 : index
      %c0_91 = arith.constant 0 : index
      %193 = vector.load %arg25[%c0_90, %c0_91] : memref<1x1xf32, #tpu.memory_space<vmem>>, vector<1x1xf32>
      %194 = vector.broadcast %193 : vector<1x1xf32> to vector<2x1xf32>
      %195 = arith.addf %192, %194 : vector<2x1xf32>
      %c0_92 = arith.constant 0 : index
      %c0_93 = arith.constant 0 : index
      %196 = vector.load %arg26[%c0_92, %c0_93] : memref<2x1xf32, #tpu.memory_space<vmem>>, vector<2x1xf32>
      tpu.vector_store %arg26[%c0_92, %c0_93], %195 {strides = array<i32>} : memref<2x1xf32, #tpu.memory_space<vmem>>, vector<2x1xf32>,
    } else {
    }
    return
  }
  func.func @transform_0(%arg0: i32) -> (i32, i32) {
    %c0_i32 = arith.constant 0 : i32
    %c0_i32_0 = arith.constant 0 : i32
    %c0_i32_1 = arith.constant 0 : i32
    return %c0_i32, %c0_i32_0 : i32, i32
  }
  func.func @transform_1(%arg0: i32) -> (i32, i32) {
    %c0_i32 = arith.constant 0 : i32
    %c0_i32_0 = arith.constant 0 : i32
    %c0_i32_1 = arith.constant 0 : i32
    return %c0_i32, %c0_i32_0 : i32, i32
  }
  func.func @transform_2(%arg0: i32) -> (i32, i32) {
    %c0_i32 = arith.constant 0 : i32
    %c0_i32_0 = arith.constant 0 : i32
    %c0_i32_1 = arith.constant 0 : i32
    return %c0_i32, %c0_i32_0 : i32, i32
  }
  func.func @transform_3(%arg0: i32) -> (i32, i32) {
    %c0_i32 = arith.constant 0 : i32
    %c0_i32_0 = arith.constant 0 : i32
    %c0_i32_1 = arith.constant 0 : i32
    return %c0_i32, %c0_i32_0 : i32, i32
  }
  func.func @transform_4(%arg0: i32) -> (i32, i32, i32) {
    %c0_i32 = arith.constant 0 : i32
    %c0_i32_0 = arith.constant 0 : i32
    %c0_i32_1 = arith.constant 0 : i32
    return %arg0, %c0_i32, %c0_i32_0 : i32, i32, i32
  }
  func.func @transform_5(%arg0: i32) -> (i32, i32, i32) {
    %c0_i32 = arith.constant 0 : i32
    %c0_i32_0 = arith.constant 0 : i32
    %c0_i32_1 = arith.constant 0 : i32
    return %arg0, %c0_i32, %c0_i32_0 : i32, i32, i32
  }
  func.func @transform_6(%arg0: i32) -> (i32, i32, i32) {
    %c0_i32 = arith.constant 0 : i32
    %c0_i32_0 = arith.constant 0 : i32
    %c0_i32_1 = arith.constant 0 : i32
    return %arg0, %c0_i32, %c0_i32_0 : i32, i32, i32
  }
  func.func @transform_7(%arg0: i32) -> (i32, i32, i32) {
    %c0_i32 = arith.constant 0 : i32
    %c0_i32_0 = arith.constant 0 : i32
    %c0_i32_1 = arith.constant 0 : i32
    return %arg0, %c0_i32, %c0_i32_0 : i32, i32, i32
  }
  func.func @transform_8(%arg0: i32) -> (i32, i32, i32) {
    %c0_i32 = arith.constant 0 : i32
    %c0_i32_0 = arith.constant 0 : i32
    %c0_i32_1 = arith.constant 0 : i32
    return %arg0, %c0_i32, %c0_i32_0 : i32, i32, i32
  }
  func.func @transform_9(%arg0: i32) -> (i32, i32, i32) {
    %c0_i32 = arith.constant 0 : i32
    %c0_i32_0 = arith.constant 0 : i32
    %c0_i32_1 = arith.constant 0 : i32
    return %arg0, %c0_i32, %c0_i32_0 : i32, i32, i32
  }
  func.func @transform_10(%arg0: i32) -> (i32, i32, i32) {
    %c0_i32 = arith.constant 0 : i32
    %c0_i32_0 = arith.constant 0 : i32
    %c0_i32_1 = arith.constant 0 : i32
    return %arg0, %c0_i32, %c0_i32_0 : i32, i32, i32
  }
  func.func @transform_11(%arg0: i32) -> (i32, i32, i32) {
    %c0_i32 = arith.constant 0 : i32
    %c0_i32_0 = arith.constant 0 : i32
    %c0_i32_1 = arith.constant 0 : i32
    return %arg0, %c0_i32, %c0_i32_0 : i32, i32, i32
  }
  func.func @transform_12(%arg0: i32) -> (i32, i32, i32) {
    %c0_i32 = arith.constant 0 : i32
    %c0_i32_0 = arith.constant 0 : i32
    %c0_i32_1 = arith.constant 0 : i32
    return %arg0, %c0_i32, %c0_i32_0 : i32, i32, i32
  }
  func.func @transform_13(%arg0: i32) -> (i32, i32, i32) {
    %c0_i32 = arith.constant 0 : i32
    %c0_i32_0 = arith.constant 0 : i32
    %c0_i32_1 = arith.constant 0 : i32
    return %arg0, %c0_i32, %c0_i32_0 : i32, i32, i32
  }
  func.func @transform_14(%arg0: i32) -> (i32, i32, i32) {
    %c0_i32 = arith.constant 0 : i32
    %c0_i32_0 = arith.constant 0 : i32
    %c0_i32_1 = arith.constant 0 : i32
    return %arg0, %c0_i32, %c0_i32_0 : i32, i32, i32
  }
  func.func @transform_15(%arg0: i32) -> (i32, i32, i32) {
    %c0_i32 = arith.constant 0 : i32
    %c0_i32_0 = arith.constant 0 : i32
    %c0_i32_1 = arith.constant 0 : i32
    return %arg0, %c0_i32, %c0_i32_0 : i32, i32, i32
  }
  func.func @transform_16(%arg0: i32) -> (i32, i32) {
    %c0_i32 = arith.constant 0 : i32
    %c0_i32_0 = arith.constant 0 : i32
    %c0_i32_1 = arith.constant 0 : i32
    return %c0_i32, %c0_i32_0 : i32, i32
  }
  func.func @transform_17(%arg0: i32) -> (i32, i32) {
    %c0_i32 = arith.constant 0 : i32
    %c0_i32_0 = arith.constant 0 : i32
    %c0_i32_1 = arith.constant 0 : i32
    return %c0_i32, %c0_i32_0 : i32, i32
  }
  func.func @transform_18(%arg0: i32) -> (i32, i32) {
    %c0_i32 = arith.constant 0 : i32
    %c0_i32_0 = arith.constant 0 : i32
    %c0_i32_1 = arith.constant 0 : i32
    return %c0_i32, %c0_i32_0 : i32, i32
  }
  func.func @transform_19(%arg0: i32) -> (i32, i32) {
    %c0_i32 = arith.constant 0 : i32
    %c0_i32_0 = arith.constant 0 : i32
    %c0_i32_1 = arith.constant 0 : i32
    return %c0_i32, %c0_i32_0 : i32, i32
  }
  func.func @transform_20(%arg0: i32) -> (i32, i32) {
    %c0_i32 = arith.constant 0 : i32
    %c0_i32_0 = arith.constant 0 : i32
    %c0_i32_1 = arith.constant 0 : i32
    return %c0_i32, %c0_i32_0 : i32, i32
  }
  func.func @transform_21(%arg0: i32) -> (i32, i32) {
    %c0_i32 = arith.constant 0 : i32
    %c0_i32_0 = arith.constant 0 : i32
    %c0_i32_1 = arith.constant 0 : i32
    return %c0_i32, %c0_i32_0 : i32, i32
  }
  func.func @transform_22(%arg0: i32) -> (i32, i32) {
    %c0_i32 = arith.constant 0 : i32
    %c0_i32_0 = arith.constant 0 : i32
    %c0_i32_1 = arith.constant 0 : i32
    return %c0_i32, %c0_i32_0 : i32, i32
  }
  func.func @transform_23(%arg0: i32) -> (i32, i32) {
    %c0_i32 = arith.constant 0 : i32
    %c0_i32_0 = arith.constant 0 : i32
    %c0_i32_1 = arith.constant 0 : i32
    return %c0_i32, %c0_i32_0 : i32, i32
  }
  func.func @transform_24(%arg0: i32) -> (i32, i32) {
    %c0_i32 = arith.constant 0 : i32
    %c0_i32_0 = arith.constant 0 : i32
    %c0_i32_1 = arith.constant 0 : i32
    return %c0_i32, %c0_i32_0 : i32, i32
  }
  func.func @transform_25(%arg0: i32) -> (i32, i32) {
    %c0_i32 = arith.constant 0 : i32
    %c0_i32_0 = arith.constant 0 : i32
    %c0_i32_1 = arith.constant 0 : i32
    return %c0_i32, %c0_i32_0 : i32, i32
  }
}

</mosaic_0001>

<bundles_post_ra>
// kernel: multimodal_forward.1
= control target key start
LH: loop header
LB: loop body
LE: loop exit
PB: predicated region body
PF: predicated region fallthrough
CT: control target
= control target key end

     0   :  { %s2420_s0 = inlined_call_operand.vmem [shape: f32[16,32], index: 0, kind: input, shape index: {}]   ;;  %s2421_s1 = inlined_call_operand.vmem [shape: s32[2,8], index: 1, kind: input, shape index: {}]   ;;  %s2422_s2 = inlined_call_operand.vmem [shape: f32[1,32], index: 2, kind: input, shape index: {}]   ;;  %s2423_s3 = inlined_call_operand.vmem [shape: f32[1,32], index: 3, kind: input, shape index: {}]   ;;  %s2424_s4 = inlined_call_operand.vmem [shape: f32[2,32,96], index: 4, kind: input, shape index: {}]   ;;  %s2425_s5 = inlined_call_operand.vmem [shape: f32[2,1,96], index: 5, kind: input, shape index: {}]   ;;  %s2426_s6 = inlined_call_operand.vmem [shape: f32[2,32,32], index: 6, kind: input, shape index: {}]   ;;  %s2427_s7 = inlined_call_operand.vmem [shape: f32[2,1,32], index: 7, kind: input, shape index: {}]   ;;  %s2428_s8 = inlined_call_operand.vmem [shape: f32[2,1,32], index: 8, kind: input, shape index: {}]   ;;  %s2429_s9 = inlined_call_operand.vmem [shape: f32[2,1,32], index: 9, kind: input, shape index: {}]   ;;  %s2430_s10 = inlined_call_operand.vmem [shape: f32[2,32,64], index: 10, kind: input, shape index: {}]   ;;  %s2431_s11 = inlined_call_operand.vmem [shape: f32[2,1,64], index: 11, kind: input, shape index: {}]   ;;  %s2432_s12 = inlined_call_operand.vmem [shape: f32[2,64,32], index: 12, kind: input, shape index: {}]   ;;  %s2433_s13 = inlined_call_operand.vmem [shape: f32[2,1,32], index: 13, kind: input, shape index: {}]   ;;  %s2434_s14 = inlined_call_operand.vmem [shape: f32[2,1,32], index: 14, kind: input, shape index: {}]   ;;  %s2435_s15 = inlined_call_operand.vmem [shape: f32[2,1,32], index: 15, kind: input, shape index: {}]   ;;  %s2436_s16 = inlined_call_operand.vmem [shape: f32[2,3], index: 16, kind: input, shape index: {}]   ;;  %s2437_s17 = inlined_call_operand.vmem [shape: f32[3,32], index: 17, kind: input, shape index: {}]   ;;  %s2438_s18 = inlined_call_operand.vmem [shape: f32[1,32], index: 18, kind: input, shape index: {}]   ;;  %s2439_s19 = inlined_call_operand.vmem [shape: f32[32,32], index: 19, kind: input, shape index: {}]   ;;  %s2440_s20 = inlined_call_operand.vmem [shape: f32[1,32], index: 20, kind: input, shape index: {}]   ;;  %s2441_s21 = inlined_call_operand.vmem [shape: f32[64,64], index: 21, kind: input, shape index: {}]   ;;  %s2442_s22 = inlined_call_operand.vmem [shape: f32[1,64], index: 22, kind: input, shape index: {}]   ;;  %s2443_s23 = inlined_call_operand.vmem [shape: f32[1,64], index: 23, kind: input, shape index: {}]   ;;  %s2444_s24 = inlined_call_operand.<no memory space> [shape: f32[1,1], index: 24, kind: input, shape index: {}]   ;;  %s2445_s25 = inlined_call_operand.vmem [shape: f32[2,1], index: 25, kind: output, shape index: {}]  }
   0x1   :  { %2450 = sst [smem:[#allocation5_spill]] %s2420_s0  ;;  %v30_v0 = vstv %s2444_s24 }
   0x2   :  { %2451 = sst [smem:[#allocation6_spill]] %s2421_s1  ;;  %31 = vst [vmem:[#allocation3] sm:$0x1] %v30_v0 }
   0x3   :  { %2452 = sst [smem:[#allocation7_spill]] %s2422_s2 }
   0x4   :  { %2453 = sst [smem:[#allocation8_spill]] %s2423_s3 }
   0x5   :  { %2454 = sst [smem:[#allocation9_spill]] %s2424_s4 }
   0x6   :  { %2455 = sst [smem:[#allocation10_spill]] %s2425_s5 }
   0x7   :  { %2456 = sst [smem:[#allocation11_spill]] %s2426_s6  ;;  %s2123_s6 = smov 0  }
   0x8   :  { %2457 = sst [smem:[#allocation12_spill]] %s2427_s7 }
   0x9   :  { %2458 = sst [smem:[#allocation13_spill]] %s2428_s8 }
   0xa   :  { %2459 = sst [smem:[#allocation14_spill]] %s2429_s9 }
   0xb   :  { %2460 = sst [smem:[#allocation15_spill]] %s2437_s17 }
   0xc   :  { %2461 = sst [smem:[#allocation16_spill]] %s2438_s18 }
   0xd   :  { %2462 = sst [smem:[#allocation17_spill]] %s2439_s19 }
   0xe   :  { %2463 = sst [smem:[#allocation18_spill]] %s2440_s20 }
   0xf   :  { %2464 = sst [smem:[#allocation19_spill]] %s2441_s21 }
  0x10   :  { %2465 = sst [smem:[#allocation20_spill]] %s2442_s22 }
  0x11   :  { %2466 = sst [smem:[#allocation21_spill]] %s2443_s23 }
  0x12   :  { %2467 = sst [smem:[#allocation22_spill]] %s2445_s25 }
  0x13 LB: > { %2468 = sst [smem:[#allocation4_spill]] %s1978_s6  ;;  %s2129_s30 = sadd.s32 4294967295, %s1978_s6   ;;  %s1978_s6 = sphi %s2123_s6, %s37_s6  }
  0x14   : > { %p1855_p0 = scmp.ge.s32.totalorder %s1978_s6, 1  ;;  %p778_p1 = scmp.lt.s32.totalorder %s1978_s6, 3 }
  0x16   : > { %p779_p2 = pnand %p1855_p0, %p778_p1 }
  0x17   : > { %p880_p3 = scmp.lt.s32.totalorder (!%p779_p2), %s2129_s30, 1  ;;  %s2470_s28 = sld [smem:[#allocation9_spill]] (!%p779_p2) }
  0x18   : > { %782 = sbr.rel (%p779_p2) target bundleno = 2933 (0xb75), region = 120  ;;  %s2471_s29 = sld [smem:[#allocation11_spill]] (!%p779_p2) }
  0x19   : > { %s2472_s23 = sld [smem:[#allocation12_spill]] (!%p779_p2)  ;;  %p1864_p4 = scmp.ne.s32.totalorder (!%p779_p2), %s2129_s30, 0 }
  0x1a   : > { %s2473_s18 = sld [smem:[#allocation13_spill]] (!%p779_p2) }
  0x1b   : > { %s2474_s1 = sld [smem:[#allocation14_spill]] (!%p779_p2) }
  0x1d   : > { %s2135_s24 = scalar_select %p880_p3, %s2129_s30, 1 }
  0x1e   : > { %s2475_s25 = sld [smem:[#allocation5_spill]] (!%p1864_p4) }
  0x1f   : > { %s1890_s7 = sshll.u32 %s2135_s24, 5  ;;  %s895_s22 = scalar_lea.vmem %s2472_s23, %s2135_s24 }
  0x20   : > { %s2145_s9 = scalar_lea.vmem %s2470_s28, %s1890_s7  ;;  %s2150_s2 = scalar_lea.vmem %s2471_s29, %s1890_s7 }
  0x21   : > { %s898_s17 = scalar_lea.vmem %s2473_s18, %s2135_s24  ;;  %s901_s8 = scalar_lea.vmem %s2474_s1, %s2135_s24 }
  0x22   : > { %s2167_s28 = scalar_lea.vmem %s2430_s10, %s1890_s7  ;;  %s909_s29 = scalar_lea.vmem %s2431_s11, %s2135_s24 }
  0x23   : > { %s1893_s19 = sshll.u32 %s2135_s24, 6  ;;  %s917_s21 = scalar_lea.vmem %s2433_s13, %s2135_s24 }
  0x24   : > { %s2177_s6 = scalar_lea.vmem %s2432_s12, %s1893_s19  ;;  %s920_s1 = scalar_lea.vmem %s2434_s14, %s2135_s24 }
  0x25   : > { %s923_s4 = scalar_lea.vmem %s2435_s15, %s2135_s24  ;;  %927 = sbr.rel (%p1864_p4) target bundleno = 320 (0x140), region = 124 }
  0x26   : > { %s2476_s3 = sld [smem:[#allocation7_spill]] (!%p1864_p4) }
  0x27   : > { %s2477_s27 = sld [smem:[#allocation8_spill]] (!%p1864_p4) }
  0x2a   : > { %v928_v1 = vld [vmem:[%s2475_s25] sm:$0xff]  ;;  %vm932_vm0 = vcmask 261120   ;;  %v929_v3 = vld [vmem:[%s2475_s25 + $0x8] sm:$0xff]  ;;  %v1980_v5 = vmov 32.0  }
  0x2b   : > { %v933_v2 = vsel %vm932_vm0, %v928_v1, 0.0  ;;  %v936_v4 = vsel %vm932_vm0, %v929_v3, 0.0  ;;  %1914 = vrcp.f32 %v1980_v5 }
  0x2c   : > { %934 = vadd.xlane.f32.xlu0 %v933_v2  ;;  %v1912_v36 = vld [vmem:[%s2476_s3] ss:$0 sm:$0xff] }
  0x2d   : > { %v1913_v39 = vld [vmem:[%s2477_s27] ss:$0 sm:$0xff] }
  0x31   : > { %v1915_v6 = vpop.eup %1914 }
  0x32   : > { %v940_v7 = vmul.f32 32.0, %v1915_v6  ;;  %vm944_vm1 = vweird.f32 %v1915_v6 }
  0x34   : > { %937 = vadd.xlane.f32.xlu0 %v936_v4  ;;  %v941_v8 = vsub.f32 1.0, %v940_v7 }
  0x36   : > { %v942_v9 = vmul.f32 %v1915_v6, %v941_v8 }
  0x38   : > { %v943_v10 = vadd.f32 %v1915_v6, %v942_v9 }
  0x3a   : > { %v945_v11 = vsel %vm944_vm1, %v1915_v6, %v943_v10 }
  0x9f   : > { %v935_v12 = vpop.xlane.xlu0 %934 }
  0xa0   : > { %v946_v13 = vmul.f32 %v945_v11, %v935_v12 }
  0xa2   : > { %v948_v14 = vsub.f32 %v928_v1, %v946_v13 }
  0xa4   : > { %v950_v15 = vmul.f32 %v948_v14, %v948_v14 }
  0xa6   : > { %v952_v16 = vsel %vm932_vm0, %v950_v15, 0.0 }
  0xa7   : > { %953 = vadd.xlane.f32.xlu1 %v952_v16  ;;  %v938_v17 = vpop.xlane.xlu0 %937 }
  0xa8   : > { %v947_v18 = vmul.f32 %v945_v11, %v938_v17 }
  0xaa   : > { %v949_v19 = vsub.f32 %v929_v3, %v947_v18 }
  0xac   : > { %v951_v20 = vmul.f32 %v949_v19, %v949_v19 }
  0xae   : > { %v955_v21 = vsel %vm932_vm0, %v951_v20, 0.0 }
  0xaf   : > { %956 = vadd.xlane.f32.xlu1 %v955_v21 }
 0x11a   : > { %v954_v22 = vpop.xlane.xlu1 %953 }
 0x11b   : > { %v958_v23 = vmul.f32 %v954_v22, %v945_v11 }
 0x11d   : > { %v960_v24 = vadd.f32 1e-12, %v958_v23 }
 0x11f   : > { %1916 = vrsqrt.f32 %v960_v24  ;;  %vm968_vm3 = vweird.f32 %v960_v24 }
 0x122   : > { %v957_v25 = vpop.xlane.xlu1 %956 }
 0x123   : > { %v959_v26 = vmul.f32 %v957_v25, %v945_v11 }
 0x125   : > { %v1917_v27 = vpop.eup %1916  ;;  %v961_v28 = vadd.f32 1e-12, %v959_v26 }
 0x126   : > { %v963_v29 = vmul.f32 %v1917_v27, %v960_v24  ;;  %vm969_vm2 = vweird.f32 %v1917_v27 }
 0x127   : > { %1918 = vrsqrt.f32 %v961_v28  ;;  %vm970_vm4 = vmor %vm968_vm3, %vm969_vm2  ;;  %vm978_vm6 = vweird.f32 %v961_v28 }
 0x128   : > { %v964_v30 = vmul.f32 %v1917_v27, %v963_v29 }
 0x12a   : > { %v965_v31 = vmul.f32 0.5, %v964_v30 }
 0x12c   : > { %v966_v32 = vsub.f32 1.5, %v965_v31 }
 0x12d   : > { %v1919_v33 = vpop.eup %1918 }
 0x12e   : > { %v967_v34 = vmul.f32 %v1917_v27, %v966_v32  ;;  %v973_v35 = vmul.f32 %v1919_v33, %v961_v28  ;;  %vm979_vm5 = vweird.f32 %v1919_v33 }
 0x12f   : > { %vm980_vm7 = vmor %vm978_vm6, %vm979_vm5 }
 0x130   : > { %v971_v37 = vsel %vm970_vm4, %v1917_v27, %v967_v34  ;;  %v974_v38 = vmul.f32 %v1919_v33, %v973_v35 }
 0x131   : > { %v982_v40 = vmul.f32 %v971_v37, %v948_v14 }
 0x132   : > { %v975_v41 = vmul.f32 0.5, %v974_v38 }
 0x133   : > { %v987_v42 = vmul.f32 %v1912_v36, %v982_v40 }
 0x134   : > { %v976_v43 = vsub.f32 1.5, %v975_v41 }
 0x135   : > { %v992_v44 = vadd.f32 %v1913_v39, %v987_v42 }
 0x136   : > { %v977_v45 = vmul.f32 %v1919_v33, %v976_v43 }
 0x137   : > { %994 = vst.msk [vmem:[#allocation2] sm:$0xff] %vm932_vm0, %v992_v44 }
 0x138   : > { %v981_v46 = vsel %vm980_vm7, %v1919_v33, %v977_v45 }
 0x139   : > { %v983_v47 = vmul.f32 %v981_v46, %v949_v19 }
 0x13b   : > { %v988_v48 = vmul.f32 %v1912_v36, %v983_v47 }
 0x13d   : > { %v993_v49 = vadd.f32 %v1913_v39, %v988_v48 }
 0x13f   : > { %995 = vst.msk [vmem:[#allocation2 + $0x8] sm:$0xff] %vm932_vm0, %v993_v49 }
 0x140 PF: > { %v1001_v50 = vld [vmem:[%s2145_s9 + $0x18] sm:$0xff]  ;;  %v1000_v51 = vld [vmem:[%s2145_s9 + $0x10] sm:$0xff]  ;;  %v999_v52 = vld [vmem:[%s2145_s9 + $0x8] sm:$0xff]  ;;  %vm1006_vm8 = vcmask 261120   ;;  %s2478_s19 = sld [smem:[#allocation10_spill]]  ;;  %s1982_s18 = smov 112  }
 0x141   : > { %1025 = vmatpush.msra.mxu0 %v1001_v50  ;;  %v998_v53 = vld [vmem:[%s2145_s9] sm:$0xff]  ;;  %s1981_s9 = smov 96   ;;  %vm1057_vm9 = vcmask 130048   ;;  %s2480_s26 = sld [smem:[#allocation6_spill]]  ;;  %vm1049_vm10 = vcmask 1041408   ;;  %vm1176_vm11 = vcmask 64512  }
 0x142   : > { %v2214_v54 = vld [vmem:[#allocation2] sm:$0xff]  ;;  %s1983_s7 = smov 64   ;;  %s1984_s27 = smov 16   ;;  %vm1504_vm3 = vcmask 523264  }
 0x143   : > { %1026 = vmatpush.msra.mxu0 %v1000_v51  ;;  %p1885_p5 = scmp.ne.s32.totalorder %s2129_s30, 1 }
 0x145   : > { %1027 = vmatpush.msra.mxu0 %v999_v52 }
 0x146   : > { %v2218_v55 = vld [vmem:[#allocation2 + $0x8] sm:$0xff]  ;;  %s2479_s23 = scalar_lea.vmem %s2478_s19, %s2135_s24 }
 0x147   : > { %1028 = vmatpush.msra.mxu0 %v998_v53  ;;  %v1925_v56 = vld [vmem:[%s2479_s23] ss:$0 sm:$0xff]  ;;  %s2488_s23 = sld [smem:[#allocation18_spill]] (!%p1885_p5) }
 0x148   : > { %1865 = vmatmul.msk.f32.vlgmr.msra.gmra.mxu0 %vm1006_vm8, %v2214_v54  ;;  %v1036_v2 = vld [vmem:[%s2480_s26] sm:$0x3]  ;;  %s2490_s26 = sld [smem:[#allocation21_spill]] (!%p1885_p5) }
 0x149   : > { %v1037_v4 = vcvt.s32.f32 %v1036_v2 }
 0x14b   : > { %v1038_v5 = vsub.f32 1.0, %v1037_v4 }
 0x14d   : > { %v1039_v6 = vmul.f32 -1e+09, %v1038_v5 }
 0x14f   : > { %v1047_v7 = vrot.slane %v1039_v6, 6 }
 0x150   : > { %1866 = vmatmul.msk.f32.gmra.mxu0 %vm1006_vm8, %v2218_v55 }
 0x151   : > { %v1050_v8 = vsel %vm1049_vm10, %v1039_v6, %v1047_v7 }
 0x152   : > { %v1164_v9 = vperm.slane %v1050_v8, 0  ;;  %v1054_v14 = vrot.slane %v1050_v8, 3  ;;  %v1052_v20 = vrot.slane %v1050_v8, 1  ;;  %v1053_v25 = vrot.slane %v1050_v8, 2  ;;  %v1338_v8 = vld [vmem:[%s2150_s2 + $0x18] sm:$0xff] }
 0x154   : > { %v1167_v15 = vperm.slane %v1054_v14, 0  ;;  %v1165_v21 = vperm.slane %v1052_v20, 0  ;;  %v1166_v27 = vperm.slane %v1053_v25, 0  ;;  %v1335_v14 = vld [vmem:[%s2150_s2] sm:$0xff] }
 0x155   : > { %v1926_v20 = vld [vmem:[%s895_s22] ss:$0 sm:$0xff] }
 0x1c5   : > { %v1030_v57 = vpop.f32.mrf.mxu0 }
 0x1c6   : > { %v2227_v58 = vadd.f32 %v1925_v56, %v1030_v57 }
 0x1c8   : > { %1055 = vrot.lane.b32.xlu1 %v2227_v58, %s1981_s9  ;;  %1042 = vrot.lane.b32.xlu0 %v2227_v58, %s1982_s18 }
 0x1cd   : > { %v1033_v59 = vpop.f32.mrf.mxu0 }
 0x1ce   : > { %v2231_v60 = vadd.f32 %v1925_v56, %v1033_v59 }
 0x1d0   : > { %1044 = vrot.lane.b32.xlu0 %v2231_v60, %s1982_s18 }
 0x23a   : > { %v1056_v61 = vpop.permute.xlu1 %1055  ;;  %v2234_v62 = vpop.permute.xlu0 %1042 }
 0x23b   : > { %1867 = vmatpush.xpose.msk.msra.mxu2 %vm1057_vm9, %v1056_v61  ;;  %1108 = vrot.lane.b32.xlu1 %v2234_v62, %s1981_s9 }
 0x23e   : > { %1868 = vmatmul.msk.f32.vlgmr.msra.gmra.mxu2 %vm1057_vm9, %v2227_v58 }
 0x242   : > { %v2240_v63 = vpop.permute.xlu0 %1044 }
 0x243   : > { %1134 = vrot.lane.b32.xlu2 %v2240_v63, %s1981_s9 }
 0x24b   : > { %1082 = vrot.lane.b32.xlu2 %v2231_v60, %s1981_s9  ;;  %s2485_s9 = sld [smem:[#allocation15_spill]] (!%p1885_p5) }
 0x29d   : > { %v1135_v0 = vpop.permute.xlu2 %1134 }
 0x29e   : > { %1873 = vmatpush.xpose.msk.msra.mxu1 %vm1057_vm9, %v1135_v0 }
 0x2a1   : > { %1874 = vmatmul.msk.f32.vlgmr.msra.gmra.mxu1 %vm1057_vm9, %v2240_v63 }
 0x2a5   : > { %v1083_v1 = vpop.permute.xlu2 %1082 }
 0x2a6   : > { %1869 = vmatpush.xpose.msk.msrb.mxu2 %vm1057_vm9, %v1083_v1 }
 0x2a9   : > { %1870 = vmatmul.msk.f32.vlgmr.msrb.gmra.mxu2 %vm1057_vm9, %v2231_v60 }
 0x2ad   : > { %v1109_v3 = vpop.permute.xlu1 %1108 }
 0x2ae   : > { %1871 = vmatpush.xpose.msk.msra.mxu3 %vm1057_vm9, %v1109_v3 }
 0x2b1   : > { %1872 = vmatmul.msk.f32.vlgmr.msra.gmra.mxu3 %vm1057_vm9, %v2234_v62 }
 0x2c1   : > { %v1079_v10 = vpop.f32.mrf.mxu2 }
 0x2c2   : > { %v1160_v11 = vmul.f32 0.25, %v1079_v10  ;;  %v1336_v10 = vld [vmem:[%s2150_s2 + $0x8] sm:$0xff] }
 0x2c4   : > { %v1172_v12 = vadd.f32 %v1164_v9, %v1160_v11  ;;  %v1337_v9 = vld [vmem:[%s2150_s2 + $0x10] sm:$0xff] }
 0x2c6   : > { %v1177_v13 = vsel %vm1176_vm11, %v1172_v12, -inf }
 0x2c7   : > { %1178 = vmax.xlane.f32.xlu0 %v1177_v13 }
 0x31e   : > { %v1157_v16 = vpop.f32.mrf.mxu1 }
 0x31f   : > { %v1163_v17 = vmul.f32 0.25, %v1157_v16 }
 0x321   : > { %v1175_v18 = vadd.f32 %v1167_v15, %v1163_v17 }
 0x323   : > { %v1186_v19 = vsel %vm1176_vm11, %v1175_v18, -inf }
 0x324   : > { %1187 = vmax.xlane.f32.xlu2 %v1186_v19 }
 0x32c   : > { %v1105_v22 = vpop.f32.mrf.mxu2 }
 0x32d   : > { %v1161_v23 = vmul.f32 0.25, %v1105_v22 }
 0x32f   : > { %v1173_v24 = vadd.f32 %v1165_v21, %v1161_v23 }
 0x331   : > { %v1180_v26 = vsel %vm1176_vm11, %v1173_v24, -inf }
 0x332   : > { %1181 = vmax.xlane.f32.xlu2 %v1180_v26 }
 0x334   : > { %v1131_v28 = vpop.f32.mrf.mxu3 }
 0x335   : > { %v1162_v29 = vmul.f32 0.25, %v1131_v28 }
 0x337   : > { %v1174_v30 = vadd.f32 %v1166_v27, %v1162_v29  ;;  %v1985_v29 = vmov 32.0  }
 0x339   : > { %v1183_v31 = vsel %vm1176_vm11, %v1174_v30, -inf }
 0x33a   : > { %1184 = vmax.xlane.f32.xlu1 %v1183_v31  ;;  %v1179_v32 = vpop.xlane.xlu0 %1178 }
 0x33b   : > { %v1189_v33 = vsub.f32 %v1172_v12, %v1179_v32 }
 0x33d   : > { %v1193_v34 = vmul.f32 1.442695, %v1189_v33 }
 0x33f   : > { %1933 = vpow2.f32 %v1193_v34 }
 0x345   : > { %v1934_v35 = vpop.eup %1933 }
 0x346   : > { %v1201_v36 = vsel %vm1176_vm11, %v1934_v35, 0.0 }
 0x347   : > { %1202 = vadd.xlane.f32.xlu0 %v1201_v36 }
 0x35b   : > { %1221 = vrot.lane.b32.xlu0 %v2227_v58, %s1983_s7  ;;  %v1920_v58 = vpack.i.bf16 %v2240_v63, %v2234_v62 }
 0x397   : > { %v1188_v37 = vpop.xlane.xlu2 %1187 }
 0x398   : > { %v1192_v38 = vsub.f32 %v1175_v18, %v1188_v37 }
 0x39a   : > { %v1199_v39 = vmul.f32 1.442695, %v1192_v38 }
 0x39c   : > { %1935 = vpow2.f32 %v1199_v39 }
 0x3a2   : > { %v1936_v40 = vpop.eup %1935 }
 0x3a3   : > { %v1210_v41 = vsel %vm1176_vm11, %v1936_v40, 0.0 }
 0x3a4   : > { %1211 = vadd.xlane.f32.xlu2 %v1210_v41 }
 0x3a5   : > { %v1182_v42 = vpop.xlane.xlu2 %1181 }
 0x3a6   : > { %v1190_v43 = vsub.f32 %v1173_v24, %v1182_v42 }
 0x3a8   : > { %v1195_v44 = vmul.f32 1.442695, %v1190_v43 }
 0x3aa   : > { %1937 = vpow2.f32 %v1195_v44  ;;  %v1440_v44 = vld [vmem:[%s2167_s28 + $0x18] sm:$0xff] }
 0x3ab   : > { %1463 = vmatpush.msrb.mxu0 %v1440_v44  ;;  %v1930_v44 = vld [vmem:[%s917_s21] ss:$0 sm:$0xff]  ;;  %s2487_s21 = sld [smem:[#allocation19_spill]] (!%p1885_p5) }
 0x3ad   : > { %v1185_v45 = vpop.xlane.xlu1 %1184 }
 0x3ae   : > { %v1191_v46 = vsub.f32 %v1174_v30, %v1185_v45  ;;  %v1439_v45 = vld [vmem:[%s2167_s28 + $0x10] sm:$0xff] }
 0x3af   : > { %1464 = vmatpush.msrb.mxu0 %v1439_v45 }
 0x3b0   : > { %v1938_v47 = vpop.eup %1937  ;;  %v1197_v48 = vmul.f32 1.442695, %v1191_v46  ;;  %v1438_v46 = vld [vmem:[%s2167_s28 + $0x8] sm:$0xff] }
 0x3b1   : > { %v1204_v49 = vsel %vm1176_vm11, %v1938_v47, 0.0  ;;  %1465 = vmatpush.msrb.mxu0 %v1438_v46 }
 0x3b2   : > { %1939 = vpow2.f32 %v1197_v48  ;;  %1205 = vadd.xlane.f32.xlu2 %v1204_v49 }
 0x3b8   : > { %v1940_v50 = vpop.eup %1939 }
 0x3b9   : > { %v1207_v51 = vsel %vm1176_vm11, %v1940_v50, 0.0 }
 0x3ba   : > { %1208 = vadd.xlane.f32.xlu1 %v1207_v51  ;;  %v1203_v52 = vpop.xlane.xlu0 %1202 }
 0x3bb   : > { %1941 = vrcp.f32 %v1203_v52 }
 0x3c1   : > { %v1942_v53 = vpop.eup %1941 }
 0x3c2   : > { %v1217_v56 = vmul.f32 %v1942_v53, %v1934_v35 }
 0x3ca   : > { %1247 = vrot.lane.b32.xlu2 %v2231_v60, %s1983_s7 }
 0x3cd   : > { %v1222_v57 = vpop.permute.xlu0 %1221 }
 0x3ce   : > { %1242 = vmatpush.msra.mxu2 %v1222_v57 }
 0x3cf   : > { %1875 = vmatmul.msk.f32.vlgmr.msra.gmra.mxu2 %vm1176_vm11, %v1217_v56 }
 0x3d3   : > { %1921 = vrot.lane.b32.xlu1 %v1920_v58, %s1983_s7 }
 0x417   : > { %v1212_v59 = vpop.xlane.xlu2 %1211 }
 0x425   : > { %v1206_v61 = vpop.xlane.xlu2 %1205 }
 0x426   : > { %1943 = vrcp.f32 %v1206_v61 }
 0x427   : > { %1945 = vrcp.f32 %v1212_v59 }
 0x42c   : > { %v1944_v0 = vpop.eup %1943 }
 0x42d   : > { %v1248_v1 = vpop.permute.xlu2 %1247  ;;  %v1218_v2 = vmul.f32 %v1944_v0, %v1938_v47  ;;  %v1209_v60 = vpop.xlane.xlu1 %1208  ;;  %v1437_v47 = vld [vmem:[%s2167_s28] sm:$0xff] }
 0x42e   : > { %1268 = vmatpush.msrb.mxu3 %v1248_v1  ;;  %1947 = vrcp.f32 %v1209_v60  ;;  %v1946_v3 = vpop.eup %1945  ;;  %1466 = vmatpush.msrb.mxu0 %v1437_v47  ;;  %v1927_v60 = vld [vmem:[%s898_s17] ss:$0 sm:$0xff] }
 0x42f   : > { %1876 = vmatmul.msk.f32.vlgmr.msrb.gmra.mxu3 %vm1176_vm11, %v1218_v2  ;;  %v1220_v6 = vmul.f32 %v1946_v3, %v1936_v40  ;;  %1949 = vrcp.f32 %v1985_v29 }
 0x430   : > { %1361 = vmatpush.msra.mxu3 %v1338_v8 }
 0x432   : > { %1362 = vmatpush.msra.mxu3 %v1337_v9 }
 0x434   : > { %v1948_v4 = vpop.eup %1947  ;;  %1363 = vmatpush.msra.mxu3 %v1336_v10 }
 0x435   : > { %v1219_v7 = vmul.f32 %v1948_v4, %v1940_v50  ;;  %v1950_v30 = vpop.eup %1949 }
 0x436   : > { %1364 = vmatpush.msra.mxu3 %v1335_v14  ;;  %v1383_v31 = vmul.f32 32.0, %v1950_v30  ;;  %vm1387_vm12 = vweird.f32 %v1950_v30  ;;  %v1499_v14 = vld [vmem:[%s2177_s6 + $0x38] sm:$0xff] }
 0x438   : > { %v1384_v32 = vsub.f32 1.0, %v1383_v31 }
 0x43a   : > { %v1385_v33 = vmul.f32 %v1950_v30, %v1384_v32 }
 0x43c   : > { %v1386_v34 = vadd.f32 %v1950_v30, %v1385_v33 }
 0x445   : > { %v1922_v62 = vpop.permute.xlu1 %1921 }
 0x446   : > { %v1924_v63 = vunpack.i.h.bf16 %v1922_v62  ;;  %v1923_v5 = vunpack.i.l.bf16 %v1922_v62 }
 0x448   : > { %1294 = vmatpush.msrb.mxu1 %v1923_v5  ;;  %1320 = vmatpush.msrb.mxu2 %v1924_v63  ;;  %v1928_v63 = vld [vmem:[%s901_s8] ss:$0 sm:$0xff]  ;;  %s2486_s8 = sld [smem:[#allocation16_spill]] (!%p1885_p5) }
 0x449   : > { %1877 = vmatmul.msk.f32.vlgmr.msrb.gmra.mxu1 %vm1176_vm11, %v1219_v7  ;;  %1878 = vmatmul.msk.f32.vlgmr.msrb.gmra.mxu2 %vm1176_vm11, %v1220_v6 }
 0x44a   : > { %1519 = vmatpush.msra.mxu1 %v1499_v14 }
 0x452   : > { %v1244_v11 = vpop.f32.mrf.mxu2 }
 0x4b2   : > { %v1270_v18 = vpop.f32.mrf.mxu3 }
 0x4c6   : > { %v1296_v12 = vpop.f32.mrf.mxu1 }
 0x4c7   : > { %1327 = vrot.lane.b32.xlu0 %v1296_v12, %s1984_s27 }
 0x4cc   : > { %v1322_v13 = vpop.f32.mrf.mxu2 }
 0x4cd   : > { %1329 = vrot.lane.b32.xlu1 %v1322_v13, %s1984_s27  ;;  %s2484_s27 = sld [smem:[#allocation17_spill]] (!%p1885_p5) }
 0x539   : > { %v1328_v15 = vpop.permute.xlu0 %1327 }
 0x53a   : > { %v1333_v16 = vsel %vm1057_vm9, %v1244_v11, %v1328_v15  ;;  %v1498_v15 = vld [vmem:[%s2177_s6 + $0x30] sm:$0xff] }
 0x53b   : > { %1879 = vmatmul.msk.f32.vlgmr.msra.gmra.mxu3 %vm1006_vm8, %v1333_v16  ;;  %1520 = vmatpush.msra.mxu1 %v1498_v15  ;;  %v1497_v16 = vld [vmem:[%s2177_s6 + $0x28] sm:$0xff]  ;;  %v1931_v15 = vld [vmem:[%s920_s1] ss:$0 sm:$0xff] }
 0x53d   : > { %1521 = vmatpush.msra.mxu1 %v1497_v16 }
 0x53f   : > { %v1330_v17 = vpop.permute.xlu1 %1329 }
 0x540   : > { %v1334_v19 = vsel %vm1057_vm9, %v1270_v18, %v1330_v17  ;;  %v1496_v17 = vld [vmem:[%s2177_s6 + $0x20] sm:$0xff]  ;;  %v1495_v18 = vld [vmem:[%s2177_s6 + $0x18] sm:$0xff] }
 0x541   : > { %1522 = vmatpush.msra.mxu1 %v1496_v17  ;;  %v1932_v17 = vld [vmem:[%s923_s4] ss:$0 sm:$0xff]  ;;  %s2491_s4 = sld [smem:[#allocation22_spill]] (!%p1885_p5) }
 0x543   : > { %1880 = vmatmul.msk.f32.gmra.mxu3 %vm1006_vm8, %v1334_v19  ;;  %1523 = vmatpush.msra.mxu1 %v1495_v18  ;;  %v1494_v19 = vld [vmem:[%s2177_s6 + $0x10] sm:$0xff] }
 0x545   : > { %1524 = vmatpush.msra.mxu1 %v1494_v19 }
 0x5be   : > { %v1366_v21 = vpop.f32.mrf.mxu3 }
 0x5bf   : > { %v1367_v22 = vadd.f32 %v1926_v20, %v1366_v21  ;;  %v1492_v21 = vld [vmem:[%s2177_s6] sm:$0xff] }
 0x5c1   : > { %v1372_v23 = vadd.f32 %v1367_v22, %v2214_v54  ;;  %v2292_v54 = vsel %vm1387_vm12, %v1950_v30, %v1386_v34  ;;  %v1929_v22 = vld [vmem:[%s909_s29] ss:$0 sm:$0xff] }
 0x5c3   : > { %v1376_v24 = vsel %vm1006_vm8, %v1372_v23, 0.0 }
 0x5c4   : > { %1377 = vadd.xlane.f32.xlu0 %v1376_v24 }
 0x5c6   : > { %v1369_v25 = vpop.f32.mrf.mxu3 }
 0x5c7   : > { %v1370_v26 = vadd.f32 %v1926_v20, %v1369_v25  ;;  %v1493_v20 = vld [vmem:[%s2177_s6 + $0x8] sm:$0xff]  ;;  %s2489_s6 = sld [smem:[#allocation20_spill]] (!%p1885_p5) }
 0x5c8   : > { %1525 = vmatpush.msra.mxu1 %v1493_v20 }
 0x5c9   : > { %v1373_v27 = vadd.f32 %v1370_v26, %v2218_v55 }
 0x5ca   : > { %1526 = vmatpush.msra.mxu1 %v1492_v21 }
 0x5cb   : > { %v1379_v28 = vsel %vm1006_vm8, %v1373_v27, 0.0 }
 0x5cc   : > { %1380 = vadd.xlane.f32.xlu1 %v1379_v28 }
 0x637   : > { %v1378_v35 = vpop.xlane.xlu0 %1377 }
 0x638   : > { %v1389_v36 = vmul.f32 %v2292_v54, %v1378_v35 }
 0x63a   : > { %v1391_v55 = vsub.f32 %v1372_v23, %v1389_v36 }
 0x63c   : > { %v1393_v37 = vmul.f32 %v1391_v55, %v1391_v55 }
 0x63e   : > { %v1395_v38 = vsel %vm1006_vm8, %v1393_v37, 0.0 }
 0x63f   : > { %1396 = vadd.xlane.f32.xlu2 %v1395_v38  ;;  %v1381_v39 = vpop.xlane.xlu1 %1380 }
 0x640   : > { %v1390_v40 = vmul.f32 %v2292_v54, %v1381_v39 }
 0x642   : > { %v1392_v41 = vsub.f32 %v1373_v27, %v1390_v40 }
 0x644   : > { %v1394_v42 = vmul.f32 %v1392_v41, %v1392_v41 }
 0x646   : > { %v1398_v43 = vsel %vm1006_vm8, %v1394_v42, 0.0 }
 0x647   : > { %1399 = vadd.xlane.f32.xlu0 %v1398_v43 }
 0x6b2   : > { %v1397_v48 = vpop.xlane.xlu2 %1396 }
 0x6b3   : > { %v1401_v49 = vmul.f32 %v1397_v48, %v2292_v54 }
 0x6b5   : > { %v1403_v50 = vadd.f32 1e-12, %v1401_v49 }
 0x6b7   : > { %1951 = vrsqrt.f32 %v1403_v50  ;;  %vm1411_vm14 = vweird.f32 %v1403_v50 }
 0x6ba   : > { %v1400_v51 = vpop.xlane.xlu0 %1399 }
 0x6bb   : > { %v1402_v52 = vmul.f32 %v1400_v51, %v2292_v54 }
 0x6bd   : > { %v1952_v53 = vpop.eup %1951  ;;  %v1404_v56 = vadd.f32 1e-12, %v1402_v52 }
 0x6be   : > { %v1406_v57 = vmul.f32 %v1952_v53, %v1403_v50  ;;  %vm1412_vm13 = vweird.f32 %v1952_v53 }
 0x6bf   : > { %1953 = vrsqrt.f32 %v1404_v56  ;;  %vm1413_vm15 = vmor %vm1411_vm14, %vm1412_vm13  ;;  %vm1421_vm1 = vweird.f32 %v1404_v56 }
 0x6c0   : > { %v1407_v58 = vmul.f32 %v1952_v53, %v1406_v57 }
 0x6c2   : > { %v1408_v59 = vmul.f32 0.5, %v1407_v58 }
 0x6c4   : > { %v1409_v61 = vsub.f32 1.5, %v1408_v59 }
 0x6c5   : > { %v1954_v0 = vpop.eup %1953 }
 0x6c6   : > { %v1410_v1 = vmul.f32 %v1952_v53, %v1409_v61  ;;  %v1416_v2 = vmul.f32 %v1954_v0, %v1404_v56  ;;  %vm1422_vm0 = vweird.f32 %v1954_v0 }
 0x6c7   : > { %vm1423_vm2 = vmor %vm1421_vm1, %vm1422_vm0 }
 0x6c8   : > { %v1414_v3 = vsel %vm1413_vm15, %v1952_v53, %v1410_v1  ;;  %v1417_v4 = vmul.f32 %v1954_v0, %v1416_v2 }
 0x6c9   : > { %v1425_v62 = vmul.f32 %v1414_v3, %v1391_v55 }
 0x6ca   : > { %v1418_v5 = vmul.f32 0.5, %v1417_v4 }
 0x6cb   : > { %v1430_v6 = vmul.f32 %v1927_v60, %v1425_v62 }
 0x6cc   : > { %v1419_v7 = vsub.f32 1.5, %v1418_v5 }
 0x6cd   : > { %v1435_v8 = vadd.f32 %v1928_v63, %v1430_v6 }
 0x6ce   : > { %v1420_v9 = vmul.f32 %v1954_v0, %v1419_v7 }
 0x6cf   : > { %1881 = vmatmul.msk.f32.vlgmr.msrb.gmra.mxu0 %vm1006_vm8, %v1435_v8 }
 0x6d0   : > { %v1424_v10 = vsel %vm1423_vm2, %v1954_v0, %v1420_v9 }
 0x6d1   : > { %v1426_v11 = vmul.f32 %v1424_v10, %v1392_v41 }
 0x6d3   : > { %v1431_v12 = vmul.f32 %v1927_v60, %v1426_v11 }
 0x6d5   : > { %v1436_v13 = vadd.f32 %v1928_v63, %v1431_v12 }
 0x6d7   : > { %1882 = vmatmul.msk.f32.gmra.mxu0 %vm1006_vm8, %v1436_v13 }
 0x74c   : > { %v1468_v23 = vpop.f32.mrf.mxu0 }
 0x74d   : > { %v1469_v24 = vadd.f32 %v1929_v22, %v1468_v23 }
 0x74f   : > { %v1474_v25 = vmul.f32 %v1469_v24, %v1469_v24 }
 0x751   : > { %v1476_v26 = vmul.f32 %v1474_v25, %v1469_v24 }
 0x753   : > { %v1478_v27 = vmul.f32 0.044715, %v1476_v26 }
 0x754   : > { %v1471_v28 = vpop.f32.mrf.mxu0 }
 0x755   : > { %v1480_v29 = vadd.f32 %v1478_v27, %v1469_v24  ;;  %v1472_v30 = vadd.f32 %v1929_v22, %v1471_v28 }
 0x757   : > { %v1482_v31 = vmul.f32 0.7978846, %v1480_v29  ;;  %v1475_v32 = vmul.f32 %v1472_v30, %v1472_v30 }
 0x759   : > { %1955 = vtanh.f32 %v1482_v31  ;;  %v1477_v33 = vmul.f32 %v1475_v32, %v1472_v30 }
 0x75b   : > { %v1479_v34 = vmul.f32 0.044715, %v1477_v33 }
 0x75d   : > { %v1481_v35 = vadd.f32 %v1479_v34, %v1472_v30 }
 0x75f   : > { %v1956_v36 = vpop.eup %1955  ;;  %v1483_v55 = vmul.f32 0.7978846, %v1481_v35 }
 0x760   : > { %v1486_v37 = vadd.f32 1.0, %v1956_v36 }
 0x761   : > { %1957 = vtanh.f32 %v1483_v55 }
 0x762   : > { %v1488_v38 = vmul.f32 0.5, %v1486_v37 }
 0x764   : > { %v1490_v39 = vmul.f32 %v1488_v38, %v1469_v24 }
 0x766   : > { %1883 = vmatmul.msk.f32.vlgmr.msra.gmra.mxu1 %vm1504_vm3, %v1490_v39 }
 0x767   : > { %v1958_v40 = vpop.eup %1957 }
 0x768   : > { %v1487_v41 = vadd.f32 1.0, %v1958_v40 }
 0x76a   : > { %v1489_v42 = vmul.f32 0.5, %v1487_v41 }
 0x76c   : > { %v1491_v43 = vmul.f32 %v1489_v42, %v1472_v30 }
 0x76e   : > { %1884 = vmatmul.msk.f32.gmra.mxu1 %vm1504_vm3, %v1491_v43 }
 0x7e3   : > { %v1528_v45 = vpop.f32.mrf.mxu1 }
 0x7e4   : > { %v1529_v46 = vadd.f32 %v1930_v44, %v1528_v45 }
 0x7e6   : > { %v1534_v47 = vadd.f32 %v1529_v46, %v1435_v8 }
 0x7e8   : > { %v1538_v48 = vsel %vm1006_vm8, %v1534_v47, 0.0 }
 0x7e9   : > { %1539 = vadd.xlane.f32.xlu1 %v1538_v48 }
 0x7eb   : > { %v1531_v49 = vpop.f32.mrf.mxu1 }
 0x7ec   : > { %v1532_v50 = vadd.f32 %v1930_v44, %v1531_v49 }
 0x7ee   : > { %v1535_v51 = vadd.f32 %v1532_v50, %v1436_v13 }
 0x7f0   : > { %v1541_v52 = vsel %vm1006_vm8, %v1535_v51, 0.0 }
 0x7f1   : > { %1542 = vadd.xlane.f32.xlu0 %v1541_v52 }
 0x85c   : > { %v1540_v53 = vpop.xlane.xlu1 %1539 }
 0x85d   : > { %v1544_v56 = vmul.f32 %v1540_v53, %v2292_v54 }
 0x85f   : > { %v1546_v57 = vsub.f32 %v1534_v47, %v1544_v56 }
 0x861   : > { %v1548_v58 = vmul.f32 %v1546_v57, %v1546_v57 }
 0x863   : > { %v1550_v59 = vsel %vm1006_vm8, %v1548_v58, 0.0 }
 0x864   : > { %v1543_v61 = vpop.xlane.xlu0 %1542  ;;  %1551 = vadd.xlane.f32.xlu2 %v1550_v59 }
 0x865   : > { %v1545_v0 = vmul.f32 %v1543_v61, %v2292_v54 }
 0x867   : > { %v1547_v1 = vsub.f32 %v1535_v51, %v1545_v0 }
 0x869   : > { %v1549_v2 = vmul.f32 %v1547_v1, %v1547_v1 }
 0x86b   : > { %v1553_v60 = vsel %vm1006_vm8, %v1549_v2, 0.0 }
 0x86c   : > { %1554 = vadd.xlane.f32.xlu1 %v1553_v60 }
 0x8d7   : > { %v1552_v3 = vpop.xlane.xlu2 %1551 }
 0x8d8   : > { %v1556_v4 = vmul.f32 %v1552_v3, %v2292_v54 }
 0x8da   : > { %v1558_v62 = vadd.f32 1e-12, %v1556_v4 }
 0x8dc   : > { %1959 = vrsqrt.f32 %v1558_v62  ;;  %vm1566_vm5 = vweird.f32 %v1558_v62 }
 0x8df   : > { %v1555_v63 = vpop.xlane.xlu1 %1554 }
 0x8e0   : > { %v1557_v5 = vmul.f32 %v1555_v63, %v2292_v54 }
 0x8e2   : > { %v1960_v6 = vpop.eup %1959  ;;  %v1559_v7 = vadd.f32 1e-12, %v1557_v5 }
 0x8e3   : > { %v1561_v8 = vmul.f32 %v1960_v6, %v1558_v62  ;;  %vm1567_vm4 = vweird.f32 %v1960_v6 }
 0x8e4   : > { %1961 = vrsqrt.f32 %v1559_v7  ;;  %vm1568_vm6 = vmor %vm1566_vm5, %vm1567_vm4  ;;  %vm1576_vm9 = vweird.f32 %v1559_v7 }
 0x8e5   : > { %v1562_v9 = vmul.f32 %v1960_v6, %v1561_v8 }
 0x8e7   : > { %v1563_v10 = vmul.f32 0.5, %v1562_v9 }
 0x8e9   : > { %v1564_v11 = vsub.f32 1.5, %v1563_v10 }
 0x8ea   : > { %v1962_v12 = vpop.eup %1961 }
 0x8eb   : > { %v1565_v13 = vmul.f32 %v1960_v6, %v1564_v11  ;;  %v1571_v14 = vmul.f32 %v1962_v12, %v1559_v7  ;;  %vm1577_vm7 = vweird.f32 %v1962_v12 }
 0x8ec   : > { %vm1578_vm10 = vmor %vm1576_vm9, %vm1577_vm7 }
 0x8ed   : > { %v1569_v54 = vsel %vm1568_vm6, %v1960_v6, %v1565_v13  ;;  %v1572_v16 = vmul.f32 %v1962_v12, %v1571_v14 }
 0x8ee   : > { %v1580_v18 = vmul.f32 %v1569_v54, %v1546_v57 }
 0x8ef   : > { %v1573_v19 = vmul.f32 0.5, %v1572_v16 }
 0x8f0   : > { %v1585_v20 = vmul.f32 %v1931_v15, %v1580_v18 }
 0x8f1   : > { %v1574_v21 = vsub.f32 1.5, %v1573_v19 }
 0x8f2   : > { %v1590_v22 = vadd.f32 %v1932_v17, %v1585_v20 }
 0x8f3   : > { %v1575_v23 = vmul.f32 %v1962_v12, %v1574_v21 }
 0x8f4   : > { %1592 = vst.msk [vmem:[#allocation2] sm:$0xff] %vm1006_vm8, %v1590_v22 }
 0x8f5   : > { %v1579_v24 = vsel %vm1578_vm10, %v1962_v12, %v1575_v23 }
 0x8f6   : > { %v1581_v25 = vmul.f32 %v1579_v24, %v1547_v1 }
 0x8f8   : > { %v1586_v26 = vmul.f32 %v1931_v15, %v1581_v25  ;;  %1597 = sbr.rel (%p1885_p5) target bundleno = 2933 (0xb75), region = 128 }
 0x8fa   : > { %v1591_v27 = vadd.f32 %v1932_v17, %v1586_v26 }
 0x8fc   : > { %1593 = vst.msk [vmem:[#allocation2 + $0x8] sm:$0xff] %vm1006_vm8, %v1591_v27 }
 0x8fd   : > { %v1599_v28 = vld [vmem:[%s2436_s16] sm:$0x3]  ;;  %v1986_v29 = vmov 0   ;;  %v1987_v30 = vmov 2   ;;  %v1988_v31 = vmov 1   ;;  %v1631_v32 = vld [vmem:[%s2484_s27 + $0x18] sm:$0xff] }
 0x8fe   : > { %1963 = vset.pattern.permute.xlu0 %v1986_v29  ;;  %1965 = vset.pattern.permute.xlu1 %v1987_v30  ;;  %v1630_v33 = vld [vmem:[%s2484_s27 + $0x10] sm:$0xff]  ;;  %v1629_v34 = vld [vmem:[%s2484_s27 + $0x8] sm:$0xff]  ;;  %v1628_v35 = vld [vmem:[%s2484_s27] sm:$0xff]  ;;  %vm1705_vm11 = vcmask 517120   ;;  %vm1714_vm12 = vcmask 1024  }
 0x8ff   : > { %1603 = vperm.xlu0 %1963, %v1599_v28   ;;  %1616 = vperm.xlu1 %1965, %v1599_v28   ;;  %v1600_v55 = vld [vmem:[%s2485_s9] sm:$0x7]  ;;  %v1671_v50 = vld [vmem:[%s2487_s21 + $0x38] sm:$0xff]  ;;  %v1670_v51 = vld [vmem:[%s2487_s21 + $0x30] sm:$0xff]  ;;  %s1989_s9 = smov 32  }
 0x900   : > { %1651 = vmatpush.msra.mxu0 %v1631_v32  ;;  %v1606_v37 = vperm.slane %v1600_v55, 0  ;;  %v1612_v38 = vperm.slane %v1600_v55, 1  ;;  %v1619_v39 = vperm.slane %v1600_v55, 2  ;;  %v1967_v46 = vld [vmem:[%s2486_s8] ss:$0 sm:$0xff]  ;;  %1687 = vmatpush.msra.mxu1 %v1671_v50  ;;  %v1669_v52 = vld [vmem:[%s2487_s21 + $0x28] sm:$0xff] }
 0x901   : > { %v1668_v53 = vld [vmem:[%s2487_s21 + $0x20] sm:$0xff]  ;;  %v1667_v56 = vld [vmem:[%s2487_s21 + $0x18] sm:$0xff]  ;;  %v1666_v57 = vld [vmem:[%s2487_s21 + $0x10] sm:$0xff] }
 0x902   : > { %1652 = vmatpush.msra.mxu0 %v1630_v33  ;;  %1688 = vmatpush.msra.mxu1 %v1670_v51  ;;  %v1665_v58 = vld [vmem:[%s2487_s21 + $0x8] sm:$0xff]  ;;  %v1968_v59 = vld [vmem:[%s2488_s23] ss:$0 sm:$0xff]  ;;  %v1971_v9 = vld [vmem:[#allocation3] ss:$0 sm:$0xff] }
 0x903   : > { %v1664_v1 = vld [vmem:[%s2487_s21] sm:$0xff] }
 0x904   : > { %1653 = vmatpush.msra.mxu0 %v1629_v34  ;;  %1689 = vmatpush.msra.mxu1 %v1669_v52  ;;  %v1598_v2 = vld [vmem:[#allocation2] ss:$8 sm:$0x3] }
 0x905   : > { %v1969_v4 = vld [vmem:[%s2489_s6] ss:$0 sm:$0xff] }
 0x906   : > { %1654 = vmatpush.msra.mxu0 %v1628_v35  ;;  %1690 = vmatpush.msra.mxu1 %v1668_v53  ;;  %v1970_v5 = vld [vmem:[%s2490_s26] ss:$0 sm:$0xff] }
 0x907   : > { %1964 = vset.pattern.permute.xlu0 %v1988_v31 }
 0x908   : > { %1609 = vperm.xlu0 %1964, %v1599_v28   ;;  %1691 = vmatpush.msra.mxu1 %v1667_v56 }
 0x90a   : > { %1692 = vmatpush.msra.mxu1 %v1666_v57 }
 0x90c   : > { %1693 = vmatpush.msra.mxu1 %v1665_v58 }
 0x90e   : > { %1694 = vmatpush.msra.mxu1 %v1664_v1 }
 0x910   : > { %1966 = vset.pattern.permute.xlu0 %v1987_v30 }
 0x971   : > { %v1604_v36 = vpop.permute.xlu0 %1603  ;;  %v1617_v40 = vpop.permute.xlu1 %1616 }
 0x972   : > { %v1607_v42 = vmul.f32 %v1606_v37, %v1604_v36  ;;  %v1620_v44 = vmul.f32 %v1619_v39, %v1617_v40 }
 0x97a   : > { %v1610_v41 = vpop.permute.xlu0 %1609 }
 0x97b   : > { %v1613_v43 = vmul.f32 %v1612_v38, %v1610_v41 }
 0x97d   : > { %v1614_v45 = vadd.f32 %v1613_v43, %v1607_v42 }
 0x97f   : > { %v1621_v47 = vadd.f32 %v1620_v44, %v1614_v45 }
 0x981   : > { %v1626_v48 = vadd.f32 %v1967_v46, %v1621_v47 }
 0x983   : > { %v1627_v49 = vmax.f32 %v1626_v48, 0.0 }
 0x985   : > { %1886 = vmatmul.msk.f32.vlgmr.msra.gmra.mxu0 %vm1006_vm8, %v1627_v49 }
 0xa02   : > { %v1656_v61 = vpop.f32.mrf.mxu0 }
 0xa03   : > { %v1657_v0 = vadd.f32 %v1968_v59, %v1656_v61 }
 0xa05   : > { %1660 = vrot.lane.b32.xlu1 %v1657_v0, %s1989_s9 }
 0xa77   : > { %v1661_v60 = vpop.permute.xlu1 %1660 }
 0xa78   : > { %v1663_v3 = vsel %vm1006_vm8, %v1598_v2, %v1661_v60 }
 0xa79   : > { %1887 = vmatmul.msk.f32.vlgmr.msra.gmra.mxu1 %vm1504_vm3, %v1663_v3 }
 0xaf6   : > { %v1696_v62 = vpop.f32.mrf.mxu1 }
 0xaf7   : > { %v1697_v63 = vadd.f32 %v1969_v4, %v1696_v62 }
 0xaf9   : > { %v1699_v6 = vmax.f32 %v1697_v63, 0.0 }
 0xafb   : > { %v1704_v7 = vmul.f32 %v1970_v5, %v1699_v6 }
 0xafd   : > { %v1706_v8 = vsel %vm1705_vm11, %v1704_v7, 0.0 }
 0xafe   : > { %1707 = vadd.xlane.f32.xlu2 %v1706_v8 }
 0xb71   : > { %v1708_v10 = vpop.xlane.xlu2 %1707 }
 0xb72   : > { %v1713_v11 = vadd.f32 %v1971_v9, %v1708_v10 }
 0xb74   : > { %1715 = vst.msk [vmem:[%s2491_s4] sm:$0x3] %vm1714_vm12, %v1713_v11 }
 0xb75 PF: > { %s2492_s7 = sld [smem:[#allocation4_spill]] }
 0xb7b   : > { %s37_s6 = sadd.s32 1, %s2492_s7  }
 0xb7c   : > { %p34_p6 = scmp.ge.s32.totalorder %s37_s6, 4  }
 0xb7e   :  { %36 = sbr.rel (!%p34_p6) target bundleno = 19 (0x13), region = 187 }

</bundles_post_ra>
